<compile_context>
chip_gen: v5e
topology: v5e:2x2
jax: 0.10.0
libtpu: 0.0.40
codegen_flags: <defaults>
</compile_context>

<pallas_src>
import functools

import jax
import jax.numpy as jnp
from jax.experimental import pallas as pl
from jax.experimental.pallas import tpu as pltpu


def _round_up(x, m):
    return ((x + m - 1) // m) * m


# ----------------------------------------------------------------------------
# 1) ROIAlign pooler (separable weights, ROI chunks, channel-tiled feature)
# ----------------------------------------------------------------------------

def _roi_align_kernel(bidx_ref, wy_ref, wx_ref, f_ref, o_ref):
    # wy_ref: (G*P, H)   bf16  stacked y-axis weights of the chunk's G ROIs
    # wx_ref: (G, P, W)  bf16  x-axis weights
    # f_ref : (H, W, Cc) bf16  channel block of this chunk's image (NHWC)
    # o_ref : (G, P, P, Cc) bf16 pooled output (channels-last -> lane-dense stores)
    del bidx_ref                                  # only used by the index_maps
    G, P, W = wx_ref.shape
    H, _, cc = f_ref.shape
    feat2d = f_ref[...].reshape(H, W * cc)
    # One MXU matmul for the H contraction: (G*P, H) @ (H, W*Cc) -> f32
    t1 = jnp.dot(wy_ref[...], feat2d, preferred_element_type=jnp.float32)
    t1 = t1.reshape(G * P, W, cc).astype(jnp.bfloat16)
    # W contraction per ROI as a batched 3-D matmul; batching over (g, p) lands the
    # result directly in (g, p, q, c) order (no transpose needed).
    wxb = jnp.broadcast_to(wx_ref[...][:, None], (G, P, P, W)).reshape(G * P, P, W)
    out = jnp.einsum('bqw,bwc->bqc', wxb, t1, preferred_element_type=jnp.float32)
    o_ref[...] = out.reshape(G, P, P, cc).astype(o_ref.dtype)


def roi_align(chunk_bidx, wy_flat, wx, feat_nhwc, pooled, roi_group):
    B, H, W, C = feat_nhwc.shape
    R_slots = wx.shape[0]
    n_chunks = R_slots // roi_group
    P = pooled
    cc = 128 if (C % 128 == 0) else C             # channel tile (bounds VMEM on v7x)
    n_cb = C // cc
    grid_spec = pltpu.PrefetchScalarGridSpec(
        num_scalar_prefetch=1,
        grid=(n_cb, n_chunks),                    # channel blocks outer -> feature block
        in_specs=[                                # only changes when the image changes
            pl.BlockSpec((roi_group * P, H), lambda ci, ri, bi: (ri, 0)),
            pl.BlockSpec((roi_group, P, W), lambda ci, ri, bi: (ri, 0, 0)),
            pl.BlockSpec((None, H, W, cc), lambda ci, ri, bi: (bi[ri], 0, 0, ci)),
        ],
        out_specs=pl.BlockSpec((roi_group, P, P, cc),
                               lambda ci, ri, bi: (ri, 0, 0, ci)),
    )
    return pl.pallas_call(
        _roi_align_kernel,
        out_shape=jax.ShapeDtypeStruct((R_slots, P, P, C), jnp.bfloat16),
        grid_spec=grid_spec,
        # channel axis "parallel" (can split across v7x's 2 TCs); ROI-chunk axis
        # "arbitrary" so the data-dependent image block stays resident.
        compiler_params=pltpu.CompilerParams(
            dimension_semantics=("parallel", "arbitrary")),
    )(chunk_bidx, wy_flat, wx, feat_nhwc)


def _axis_weights(c, size):
    # Bilinear weights of sample coordinate `c` onto grid positions 0..size-1,
    # matching the (non-aligned) ROIAlign CUDA kernel boundary handling.
    valid = ((c >= -1.0) & (c <= float(size))).astype(jnp.float32)
    c = jnp.clip(c, 0.0, float(size - 1))
    low = jnp.minimum(jnp.floor(c), float(size - 1))
    high = jnp.minimum(low + 1.0, float(size - 1))
    l = c - low
    h = 1.0 - l
    idx = jnp.arange(size, dtype=jnp.float32)
    w = h[..., None] * (idx == low[..., None]) + l[..., None] * (idx == high[..., None])
    return w * valid[..., None]


def roi_align_separable_weights(boxes, H, W, pooled, spatial_scale, sampling_ratio):
    # ROIAlign = avg over sr*sr samples of separable bilinear interp, so the sample
    # average folds into per-axis weights:  pooled = Wy @ F @ Wx^T (per channel).
    x1 = boxes[:, 0] * spatial_scale
    y1 = boxes[:, 1] * spatial_scale
    x2 = boxes[:, 2] * spatial_scale
    y2 = boxes[:, 3] * spatial_scale
    roi_w = jnp.maximum(x2 - x1, 1.0)
    roi_h = jnp.maximum(y2 - y1, 1.0)
    bin_w = roi_w / pooled
    bin_h = roi_h / pooled
    sr = sampling_ratio
    grid = jnp.arange(pooled, dtype=jnp.float32)[:, None] + \
        (jnp.arange(sr, dtype=jnp.float32)[None, :] + 0.5) / sr          # (P, sr)
    ys = y1[:, None, None] + grid[None] * bin_h[:, None, None]           # (R, P, sr)
    xs = x1[:, None, None] + grid[None] * bin_w[:, None, None]           # (R, P, sr)
    wy = _axis_weights(ys, H).mean(axis=2)                               # (R, P, H)
    wx = _axis_weights(xs, W).mean(axis=2)                               # (R, P, W)
    return wy, wx


def _group_rois_by_image(batch_idx, B, G):
    """Sort ROIs by image and pack each image's ROIs into G-sized padded chunks."""
    R = batch_idx.shape[0]
    order = jnp.argsort(batch_idx)                                  # stable
    bidx_s = batch_idx[order]
    counts = jnp.bincount(batch_idx, length=B).astype(jnp.int32)
    padded_counts = ((counts + G - 1) // G) * G
    pad_start = jnp.concatenate(
        [jnp.zeros((1,), jnp.int32), jnp.cumsum(padded_counts)[:-1].astype(jnp.int32)])
    cnt_start = jnp.concatenate(
        [jnp.zeros((1,), jnp.int32), jnp.cumsum(counts)[:-1].astype(jnp.int32)])
    slot = pad_start[bidx_s] + (jnp.arange(R, dtype=jnp.int32) - cnt_start[bidx_s])
    R_slots = _round_up(R + B * (G - 1), G)                         # static upper bound
    n_chunks = R_slots // G
    pad_end = jnp.cumsum(padded_counts).astype(jnp.int32)
    chunk_start = jnp.arange(n_chunks, dtype=jnp.int32) * G
    chunk_bidx = jnp.searchsorted(pad_end, chunk_start, side='right')
    chunk_bidx = jnp.minimum(chunk_bidx, B - 1).astype(jnp.int32)
    return order, slot, chunk_bidx, R_slots


# ----------------------------------------------------------------------------
# 2) Fused Xconv stack: all 3x3 conv + bias + ReLU layers in one kernel
# ----------------------------------------------------------------------------

def _xconv_stack_kernel(*refs, num_layers, pooled, dilation):
    # refs = x, (w_0, b_0, ..., w_{L-1}, b_{L-1}), o, (pad_0..pad_{L-1}, acc_0..acc_{L-1})
    L = num_layers
    x_ref = refs[0]
    o_ref = refs[1 + 2 * L]
    scratch = refs[2 + 2 * L:]
    pad_refs = scratch[:L]
    acc_refs = scratch[L:]
    P, d = pooled, dilation
    nR = x_ref.shape[0]
    x = x_ref[...]                                                  # (nR, P, P, C0) bf16
    for l in range(L):
        w_ref = refs[1 + 2 * l]                                     # (9, Cin, Cout) bf16
        b_ref = refs[2 + 2 * l]                                     # (1, Cout) f32
        pad_ref = pad_refs[l]                                       # (nR, P+2d, Wpad, Cin)
        acc_ref = acc_refs[l]                                       # (nR*P*P, Cout) f32
        cin, cout = w_ref.shape[1], w_ref.shape[2]
        hpad, wpad = pad_ref.shape[1], pad_ref.shape[2]
        dt = pad_ref.dtype
        # zero only the halo strips (interior is overwritten below); safe under any
        # megacore split of the grid axis, and ~4x fewer vector stores than a full zero.
        pad_ref[:, :d, :, :] = jnp.zeros((nR, d, wpad, cin), dt)
        pad_ref[:, d + P:, :, :] = jnp.zeros((nR, hpad - d - P, wpad, cin), dt)
        pad_ref[:, d:d + P, :d, :] = jnp.zeros((nR, P, d, cin), dt)
        pad_ref[:, d:d + P, d + P:, :] = jnp.zeros((nR, P, wpad - d - P, cin), dt)
        pad_ref[:, d:d + P, d:d + P, :] = x
        # 9 shifted-tap MXU dots accumulating into a VMEM f32 scratch (no SSA spills).
        t = 0
        for kh in range(3):
            for kw in range(3):
                xs = pad_ref[:, kh * d:kh * d + P, kw * d:kw * d + P, :]
                contrib = jnp.dot(xs.reshape(nR * P * P, cin), w_ref[kh * 3 + kw],
                                  preferred_element_type=jnp.float32)
                if t == 0:
                    acc_ref[...] = contrib
                else:
                    acc_ref[...] += contrib
                t += 1
        y = jnp.maximum(acc_ref[...] + b_ref[...], 0.0)             # bias + ReLU (f32)
        x = y.reshape(nR, P, P, cout).astype(o_ref.dtype)
    o_ref[...] = x


def xconv_stack(x, conv_params, *, dilation, roi_chunk, vmem_limit_bytes=None):
    R_pad, P, _, c0 = x.shape
    L = len(conv_params)
    d = dilation
    wpad = _round_up(P + 2 * d, 8)                # keep tap windows sublane-tile aligned
    cins = []
    c = c0
    for p in conv_params:
        cins.append(c)
        c = p['w'].shape[2]
    c_last = c

    kernel = functools.partial(_xconv_stack_kernel, num_layers=L, pooled=P, dilation=d)

    in_specs = [pl.BlockSpec((roi_chunk, P, P, c0), lambda i: (i, 0, 0, 0))]
    args = [x]
    for p in conv_params:
        cin, cout = p['w'].shape[1], p['w'].shape[2]
        # weights/bias: constant block index across the grid -> stay resident in VMEM.
        in_specs.append(pl.BlockSpec((9, cin, cout), lambda i: (0, 0, 0)))
        in_specs.append(pl.BlockSpec((1, cout), lambda i: (0, 0)))
        args += [p['w'], p['b']]

    scratch = [pltpu.VMEM((roi_chunk, P + 2 * d, wpad, cins[l]), jnp.bfloat16)
               for l in range(L)]
    scratch += [pltpu.VMEM((roi_chunk * P * P, p['w'].shape[2]), jnp.float32)
                for p in conv_params]

    cp = dict(dimension_semantics=("parallel",))
    if vmem_limit_bytes is not None:
        cp['vmem_limit_bytes'] = vmem_limit_bytes

    return pl.pallas_call(
        kernel,
        out_shape=jax.ShapeDtypeStruct((R_pad, P, P, c_last), jnp.bfloat16),
        grid=(R_pad // roi_chunk,),
        in_specs=in_specs,
        out_specs=pl.BlockSpec((roi_chunk, P, P, c_last), lambda i: (i, 0, 0, 0)),
        scratch_shapes=scratch,
        compiler_params=pltpu.CompilerParams(**cp),
    )(*args)


# ----------------------------------------------------------------------------
# 3) pred_fc6: tiled matmul + bias + ReLU with K-accumulation
# ----------------------------------------------------------------------------

def _fc_relu_kernel(x_ref, w_ref, b_ref, o_ref, acc_ref):
    @pl.when(pl.program_id(2) == 0)
    def _():
        acc_ref[...] = jnp.zeros_like(acc_ref)

    acc_ref[...] += jnp.dot(x_ref[...], w_ref[...],
                            preferred_element_type=jnp.float32)

    @pl.when(pl.program_id(2) == pl.num_programs(2) - 1)
    def _():
        o_ref[...] = jnp.maximum(acc_ref[...] + b_ref[...], 0.0).astype(o_ref.dtype)


def fc_relu(x, params, *, tm=256, vmem_limit_bytes=None):
    # fc weight/bias are pre-cast/padded once in make_params (hoisted out of forward).
    # tm=256, tn<=1024, tk<=1024: ~7 MB of double-buffered blocks -> fits v5e's 16 MiB
    # scoped default; raise vmem_limit_bytes to sweep bigger tiles on v6e/v7x.
    wp, bp = params['fc_wp'], params['fc_bp']
    N = params['fc_n']
    tk, tn = params['fc_tk'], params['fc_tn']
    Kp, Np = wp.shape
    M, K = x.shape
    tm = min(tm, _round_up(M, 8))
    Mp = _round_up(M, tm)
    xp = jnp.pad(x.astype(jnp.bfloat16), ((0, Mp - M), (0, Kp - K)))
    cp = dict(dimension_semantics=("parallel", "parallel", "arbitrary"))
    if vmem_limit_bytes is not None:
        cp['vmem_limit_bytes'] = vmem_limit_bytes
    out = pl.pallas_call(
        _fc_relu_kernel,
        out_shape=jax.ShapeDtypeStruct((Mp, Np), jnp.float32),
        grid=(Mp // tm, Np // tn, Kp // tk),
        in_specs=[
            pl.BlockSpec((tm, tk), lambda i, j, k: (i, k)),
            pl.BlockSpec((tk, tn), lambda i, j, k: (k, j)),
            pl.BlockSpec((1, tn), lambda i, j, k: (0, j)),
        ],
        out_specs=pl.BlockSpec((tm, tn), lambda i, j, k: (i, j)),
        scratch_shapes=[pltpu.VMEM((tm, tn), jnp.float32)],
        compiler_params=pltpu.CompilerParams(**cp),
    )(xp, wp, bp)
    return out[:M, :N]


# ----------------------------------------------------------------------------
# full module forward
# ----------------------------------------------------------------------------

def fpn_xconv1fc_feature_extractor(x_nchw, rois, params, *, pooled, spatial_scale,
                                   sampling_ratio, dilation=1, roi_group=8,
                                   roi_chunk=16):
    """x_nchw: (B, C, H, W) feature map; rois: (R, 5) [batch_idx, x1, y1, x2, y2]."""
    B, C, H, W = x_nchw.shape
    R = rois.shape[0]
    # NHWC bf16 feature map: halves HBM/VMEM traffic and feeds the MXU bf16.
    feat = jnp.transpose(x_nchw, (0, 2, 3, 1)).astype(jnp.bfloat16)
    batch_idx = rois[:, 0].astype(jnp.int32)
    boxes = rois[:, 1:5].astype(jnp.float32)

    # Group ROIs by image into padded chunks of `roi_group` so each pooler grid step
    # handles G ROIs of one image (padding slots have zero weights -> zero output).
    order, slot, chunk_bidx, R_slots = _group_rois_by_image(batch_idx, B, roi_group)
    boxes_s = boxes[order]

    # --- pooler (ROIAlign) ---
    wy, wx = roi_align_separable_weights(boxes_s, H, W, pooled, spatial_scale,
                                         sampling_ratio)
    wy_slots = jnp.zeros((R_slots, pooled, H), jnp.float32).at[slot].set(wy)
    wx_slots = jnp.zeros((R_slots, pooled, W), jnp.float32).at[slot].set(wx)
    wy_flat = wy_slots.reshape(R_slots * pooled, H).astype(jnp.bfloat16)
    wx_b = wx_slots.astype(jnp.bfloat16)
    x = roi_align(chunk_bidx, wy_flat, wx_b, feat, pooled, roi_group)
    # x: (R_slots, P, P, C) bf16, channels-last (no wrapper transpose needed)

    # --- xconv blocks (fused) ---
    R_pad = _round_up(R_slots, roi_chunk)
    if R_pad != R_slots:
        x = jnp.pad(x, ((0, R_pad - R_slots), (0, 0), (0, 0), (0, 0)))
    x = xconv_stack(x, params['convs'], dilation=dilation, roi_chunk=roi_chunk)

    # --- flatten + pred_fc6 + ReLU ---
    x_flat = x.reshape(R_pad, -1)       # NHWC-flatten; fc weight rows use the same order
    y = fc_relu(x_flat, params)                                       # (R_pad, D) f32

    # gather real ROIs out of the padded slot layout and undo the batch-index sort
    inv = jnp.argsort(order)
    return y[slot][inv]


# ----------------------------------------------------------------------------
# parameters
# ----------------------------------------------------------------------------

def make_params(key, in_c, conv_channels, pooled, fc_dim):
    convs = []
    cin = in_c
    k = key
    for cout in conv_channels:
        k, kw_, kb_ = jax.random.split(k, 3)
        # PyTorch conv weight (Cout, Cin, 3, 3) is stored here as (kh*3+kw, Cin, Cout).
        w = 0.1 * jax.random.normal(kw_, (3, 3, cin, cout), jnp.float32)
        w = w.reshape(9, cin, cout).astype(jnp.bfloat16)
        b = 0.01 * jax.random.normal(kb_, (1, cout), jnp.float32)
        convs.append({'w': w, 'b': b})
        cin = cout
    k, kw_, kb_ = jax.random.split(k, 3)
    K = cin * pooled * pooled
    N = fc_dim
    # NOTE: fc_w rows are in NHWC-flatten order (p, q, c); a PyTorch checkpoint
    # (NCHW flatten) needs a one-time row permutation when loading.
    fc_w = 0.05 * jax.random.normal(kw_, (K, N), jnp.float32)
    fc_b = 0.01 * jax.random.normal(kb_, (N,), jnp.float32)
    # Hoisted one-time FC weight prep: bf16 cast + pad to the kernel tiles.
    tk = min(1024, _round_up(K, 128))
    tn = min(1024, _round_up(N, 128))
    Kp = _round_up(K, tk)
    Np = _round_up(N, tn)
    fc_wp = jnp.pad(fc_w.astype(jnp.bfloat16), ((0, Kp - K), (0, Np - N)))
    fc_bp = jnp.pad(fc_b.reshape(1, N).astype(jnp.float32), ((0, 0), (0, Np - N)))
    return {'convs': convs, 'fc_wp': fc_wp, 'fc_bp': fc_bp,
            'fc_k': K, 'fc_n': N, 'fc_tk': tk, 'fc_tn': tn}


# ----------------------------------------------------------------------------
# main
# ----------------------------------------------------------------------------

if __name__ == "__main__":
    key = jax.random.PRNGKey(0)
    k_feat, k_par = jax.random.split(key)

    # Small shapes (real module: in=256, CONV_LAYERS=(256,)*4, pooled=14, MLP_HEAD_DIM=1024).
    B, C_in, H, W = 2, 16, 8, 8          # backbone feature map (NCHW)
    pooled = 8                           # POOLER_RESOLUTION (scaled down)
    spatial_scale = 0.5                  # feature stride 2 for this synthetic example
    sampling_ratio = 2                   # POOLER_SAMPLING_RATIO (fixed; adaptive sr=0 is data-dependent)
    conv_channels = (16, 16)             # CONV_LAYERS (scaled down)
    fc_dim = 32                          # MLP_HEAD_DIM (scaled down)

    x = jax.random.normal(k_feat, (B, C_in, H, W), jnp.float32)
    # proposals: (batch_idx, x1, y1, x2, y2) in image coordinates (image ~16x16 here)
    rois = jnp.array([[0., 1., 1., 10., 12.],
                      [1., 0., 2., 14., 9.],
                      [0., 3., 0., 8., 15.]], jnp.float32)

    params = make_params(k_par, C_in, conv_channels, pooled, fc_dim)

    out = fpn_xconv1fc_feature_extractor(
        x, rois, params, pooled=pooled, spatial_scale=spatial_scale,
        sampling_ratio=sampling_ratio, dilation=1, roi_group=8, roi_chunk=16)
    jax.block_until_ready(out)
    assert out.shape == (rois.shape[0], fc_dim), out.shape
    print("KERNEL_OK")
</pallas_src>

<mosaic_0001>
module attributes {stable_mosaic.version = 11 : i64} {
  func.func @_roi_align_kernel(%arg0: i32, %arg1: i32, %arg2: memref<3xi32, #tpu.memory_space<smem>>, %arg3: memref<64x8xbf16, #tpu.memory_space<vmem>>, %arg4: memref<8x8x8xbf16, #tpu.memory_space<vmem>>, %arg5: memref<1x8x8x16xbf16, #tpu.memory_space<vmem>>, %arg6: memref<8x8x8x16xbf16, #tpu.memory_space<vmem>>) attributes {dimension_semantics = [#tpu.dimension_semantics<parallel>, #tpu.dimension_semantics<arbitrary>], iteration_bounds = array<i64: 1, 3>, scalar_prefetch = 1 : i64, scratch_operands = 0 : i64, tpu.core_type = #tpu.core_type<tc>, window_params = [{transform_indices = @transform_0, window_bounds = array<i64: 64, 8>}, {transform_indices = @transform_1, window_bounds = array<i64: 8, 8, 8>}, {transform_indices = @transform_2, window_bounds = array<i64: 1, 8, 8, 16>}, {transform_indices = @transform_3, window_bounds = array<i64: 8, 8, 8, 16>}]} {
    %c0 = arith.constant 0 : index
    %c0_0 = arith.constant 0 : index
    %c0_1 = arith.constant 0 : index
    %c0_2 = arith.constant 0 : index
    %0 = vector.load %arg5[%c0, %c0_0, %c0_1, %c0_2] : memref<1x8x8x16xbf16, #tpu.memory_space<vmem>>, vector<1x8x8x16xbf16>
    %1 = vector.shape_cast %0 : vector<1x8x8x16xbf16> to vector<8x8x16xbf16>
    %2 = vector.shape_cast %1 : vector<8x8x16xbf16> to vector<8x128xbf16>
    %c0_3 = arith.constant 0 : index
    %c0_4 = arith.constant 0 : index
    %3 = vector.load %arg3[%c0_3, %c0_4] : memref<64x8xbf16, #tpu.memory_space<vmem>>, vector<64x8xbf16>
    %cst = arith.constant dense<0.000000e+00> : vector<64x128xf32>
    %4 = tpu.matmul %3, %2, %cst {dimension_numbers = #tpu.dot_dimension_numbers<[1], [0], [0], [1], [0, 0, 1, 1], [], []>} : vector<64x8xbf16>, vector<8x128xbf16>, vector<64x128xf32> -> vector<64x128xf32>
    %5 = vector.shape_cast %4 : vector<64x128xf32> to vector<64x8x16xf32>
    %6 = arith.truncf %5 : vector<64x8x16xf32> to vector<64x8x16xbf16>
    %c0_5 = arith.constant 0 : index
    %c0_6 = arith.constant 0 : index
    %c0_7 = arith.constant 0 : index
    %7 = vector.load %arg4[%c0_5, %c0_6, %c0_7] : memref<8x8x8xbf16, #tpu.memory_space<vmem>>, vector<8x8x8xbf16>
    %8 = vector.shape_cast %7 : vector<8x8x8xbf16> to vector<8x1x8x8xbf16>
    %9 = vector.shape_cast %8 : vector<8x1x8x8xbf16> to vector<8x1x8x8xbf16>
    %10 = vector.broadcast %9 : vector<8x1x8x8xbf16> to vector<8x8x8x8xbf16>
    %11 = vector.shape_cast %10 : vector<8x8x8x8xbf16> to vector<64x8x8xbf16>
    "tpu.trace_start"() <{level = 10 : i32, message = "bqw,bwc->bqc"}> : () -> ()
    %cst_8 = arith.constant dense<0.000000e+00> : vector<64x8x16xf32>
    %12 = tpu.matmul %11, %6, %cst_8 {dimension_numbers = #tpu.dot_dimension_numbers<[2], [1], [1], [2], [0, 0, 0, 1, 1, 2], [0], [0]>} : vector<64x8x8xbf16>, vector<64x8x16xbf16>, vector<64x8x16xf32> -> vector<64x8x16xf32>
    "tpu.trace_stop"() : () -> ()
    %13 = vector.shape_cast %12 : vector<64x8x16xf32> to vector<8x8x8x16xf32>
    %14 = arith.truncf %13 : vector<8x8x8x16xf32> to vector<8x8x8x16xbf16>
    %c0_9 = arith.constant 0 : index
    %c0_10 = arith.constant 0 : index
    %c0_11 = arith.constant 0 : index
    %c0_12 = arith.constant 0 : index
    %15 = vector.load %arg6[%c0_9, %c0_10, %c0_11, %c0_12] : memref<8x8x8x16xbf16, #tpu.memory_space<vmem>>, vector<8x8x8x16xbf16>
    tpu.vector_store %arg6[%c0_9, %c0_10, %c0_11, %c0_12], %14 {strides = array<i32>} : memref<8x8x8x16xbf16, #tpu.memory_space<vmem>>, vector<8x8x8x16xbf16>,
    return
  }
  func.func @transform_0(%arg0: i32, %arg1: i32, %arg2: memref<3xi32, #tpu.memory_space<smem>>) -> (i32, i32) {
    %c0_i32 = arith.constant 0 : i32
    %c0_i32_0 = arith.constant 0 : i32
    return %arg1, %c0_i32 : i32, i32
  }
  func.func @transform_1(%arg0: i32, %arg1: i32, %arg2: memref<3xi32, #tpu.memory_space<smem>>) -> (i32, i32, i32) {
    %c0_i32 = arith.constant 0 : i32
    %c0_i32_0 = arith.constant 0 : i32
    %c0_i32_1 = arith.constant 0 : i32
    return %arg1, %c0_i32, %c0_i32_0 : i32, i32, i32
  }
  func.func @transform_2(%arg0: i32, %arg1: i32, %arg2: memref<3xi32, #tpu.memory_space<smem>>) -> (i32, i32, i32, i32) {
    %0 = arith.index_cast %arg1 : i32 to index
    %1 = memref.load %arg2[%0] : memref<3xi32, #tpu.memory_space<smem>>
    %c0_i32 = arith.constant 0 : i32
    %c0_i32_0 = arith.constant 0 : i32
    %c0_i32_1 = arith.constant 0 : i32
    return %1, %c0_i32, %c0_i32_0, %arg0 : i32, i32, i32, i32
  }
  func.func @transform_3(%arg0: i32, %arg1: i32, %arg2: memref<3xi32, #tpu.memory_space<smem>>) -> (i32, i32, i32, i32) {
    %c0_i32 = arith.constant 0 : i32
    %c0_i32_0 = arith.constant 0 : i32
    %c0_i32_1 = arith.constant 0 : i32
    return %arg1, %c0_i32, %c0_i32_0, %arg0 : i32, i32, i32, i32
  }
}

</mosaic_0001>

<bundles_post_ra>
// kernel: tpu_custom_call.1
= control target key start
LH: loop header
LB: loop body
LE: loop exit
PB: predicated region body
PF: predicated region fallthrough
CT: control target
= control target key end

     0   :  { %s3089_s18 = smov [#allocation3]   ;;  %s4482_s0 = inlined_call_operand.vmem [shape: s32[3], index: 0, kind: input, shape index: {}]   ;;  %s4483_s1 = inlined_call_operand.vmem [shape: bf16[192,8], index: 1, kind: input, shape index: {}]   ;;  %s4484_s2 = inlined_call_operand.vmem [shape: bf16[24,8,8], index: 2, kind: input, shape index: {}]   ;;  %s4485_s3 = inlined_call_operand.vmem [shape: bf16[2,8,8,16], index: 3, kind: input, shape index: {}]   ;;  %s4486_s4 = inlined_call_operand.vmem [shape: bf16[24,8,8,16], index: 4, kind: output, shape index: {}]  }
   0x1   :  { %s10_s17 = sshll.u32 %s4482_s0, 4  ;;  %s11_s17 = int_to_ptr.vmem [resolvable:$true] %s10_s17 }
   0x2   :  { %13 = dma.vmem_to_smem %s11_s17, 16, %s3089_s18, [#allocation2] }
   0x3   :  { %3075 = dma.done.wait [#allocation2], 16 }
   0x4   :  { %3076 = vsyncadd [#allocation2], 4294967280 }
   0x5   :  { %16 = sfence }
   0x6   :  { %s3127_s19 = smov 0   ;;  %s3129_s20 = smov 0  }
   0x7   :  { %s3131_s21 = smov 0  }
   0x8 LB: > { %s31_s0 = sadd.s32 1, %s3083_s20  ;;  %p2915_p0 = scmp.ge.s32.totalorder %s3087_s21, 1  ;;  %s3087_s21 = sphi %s3131_s21, %s22_s21   ;;  %s3083_s20 = sphi %s3129_s20, %s4488_s20   ;;  %s3079_s19 = sphi %s3127_s19, %s4487_s19  }
   0x9   : > { %p32_p1 = scmp.ge.s32.totalorder %s31_s0, 3  ;;  %p191_p2 = scmp.lt.s32.totalorder %s3087_s21, 4 }
   0xb   : > { %s4490_s0 = smov (%p32_p1, %s31_s0), 0  ;;  %p192_p3 = pnand %p2915_p0, %p191_p2 }
   0xc   : > { %s245_s22 = sld [smem:[#allocation3 + %s3079_s19]] (!%p192_p3)  ;;  %s3092_s27 = smov (!%p192_p3), 16  }
   0xd   : > { %195 = sbr.rel (%p192_p3) target bundleno = 851 (0x353), region = 32  ;;  %s3093_s28 = smov (!%p192_p3), 80  }
   0xe   : > { %s3094_s29 = smov (!%p192_p3), 48   ;;  %s3095_s30 = smov (!%p192_p3), 32  }
   0xf   : > { %s3096_s5 = smov (!%p192_p3), 96   ;;  %s3097_s6 = smov (!%p192_p3), 64  }
  0x10   : > { %s3098_s7 = smov (!%p192_p3), 112   ;;  %s2916_s8 = sshll.u32 (!%p192_p3), %s3079_s19, 3 }
  0x11   : > { %p234_p5 = scmp.lt.s32.totalorder (!%p192_p3), %s2916_s8, 23 }
  0x12   : > { %p246_p4 = scmp.lt.s32.totalorder %s245_s22, 1  ;;  %v3090_v0 = vmov 1983009808   ;;  %vm275_vm0 = vcmask 1047556   ;;  %v3091_v14 = vmov 1934713408  }
  0x13   : > { %v278_v1 = vunpack.c.l.s4 %v3090_v0  ;;  %v292_v15 = vunpack.c.l.s4 %v3091_v14  ;;  %vm383_vm1 = vcmask 130048   ;;  %vm387_vm2 = vcmask 261120   ;;  %s4494_s8 = smov (!%p234_p5, %s2916_s8), 23 }
  0x14   : > { %s4492_s22 = smov (!%p246_p4, %s245_s22), 1  ;;  %vm390_vm3 = vcmask 392192   ;;  %vm393_vm4 = vcmask 523264   ;;  %vm396_vm5 = vcmask 654336   ;;  %s2917_s9 = sshll.u32 %s4494_s8, 2  ;;  %vm399_vm6 = vcmask 785408  }
  0x15   : > { %s3011_s23 = sshll.u32 %s4492_s22, 5  ;;  %v3151_v11 = vunpack.c.0.s8 %v278_v1  ;;  %v3161_v25 = vunpack.c.0.s8 %v292_v15  ;;  %vm402_vm7 = vcmask 916480   ;;  %vm446_vm8 = vcmask 1043456   ;;  %s237_s12 = scalar_lea.vmem %s4483_s1, %s2917_s9 }
  0x16   : > { %s253_s26 = scalar_lea.vmem %s4485_s3, %s3011_s23  ;;  %vm433_vm9 = vcmask 64512   ;;  %s3392_s15 = scalar_lea.vmem %s4484_s2, %s2917_s9  ;;  %vm2735_vm10 = vcmask 125952  }
  0x17   : > { %v266_v2 = vld [vmem:[%s253_s26] sm:$0xf]  ;;  %v267_v3 = vld [vmem:[%s253_s26 + $0x4] sm:$0xf]  ;;  %v268_v4 = vld [vmem:[%s253_s26 + $0x8] sm:$0xf] }
  0x18   : > { %v269_v5 = vld [vmem:[%s253_s26 + $0xc] sm:$0xf]  ;;  %v270_v6 = vld [vmem:[%s253_s26 + $0x10] sm:$0xf]  ;;  %v271_v7 = vld [vmem:[%s253_s26 + $0x14] sm:$0xf] }
  0x19   : > { %v272_v8 = vld [vmem:[%s253_s26 + $0x18] sm:$0xf]  ;;  %v273_v9 = vld [vmem:[%s253_s26 + $0x1c] sm:$0xf]  ;;  %v274_v10 = vrot.slane %v270_v6, 4  ;;  %v303_v12 = vrot.slane %v271_v7, 4 }
  0x1a   : > { %v281_v13 = vrot.slane %v272_v8, 4  ;;  %v309_v16 = vrot.slane %v273_v9, 4  ;;  %s3012_s16 = sshll.u32 %s4494_s8, 5 }
  0x1b   : > { %v276_v17 = vsel %vm275_vm0, %v274_v10, %v266_v2  ;;  %v304_v18 = vsel %vm275_vm0, %v303_v12, %v267_v3  ;;  %s4075_s19 = scalar_lea.vmem %s4486_s4, %s3012_s16 }
  0x1c   : > { %v280_v19 = vperm.slane %v276_v17, %v3151_v11  ;;  %v282_v20 = vsel %vm275_vm0, %v281_v13, %v268_v4  ;;  %v308_v21 = vperm.slane %v304_v18, %v3151_v11  ;;  %v310_v22 = vsel %vm275_vm0, %v309_v16, %v269_v5 }
  0x1d   : > { %v286_v23 = vperm.slane %v282_v20, %v3151_v11  ;;  %v314_v24 = vperm.slane %v310_v22, %v3151_v11 }
  0x1e   : > { %v289_v26 = vrot.slane %v280_v19, 4  ;;  %v317_v27 = vrot.slane %v308_v21, 4 }
  0x1f   : > { %v287_v28 = vrot.slane %v286_v23, 4  ;;  %v315_v29 = vrot.slane %v314_v24, 4 }
  0x20   : > { %v290_v30 = vsel %vm275_vm0, %v286_v23, %v289_v26  ;;  %v318_v31 = vsel %vm275_vm0, %v314_v24, %v317_v27 }
  0x21   : > { %v288_v32 = vsel %vm275_vm0, %v287_v28, %v280_v19  ;;  %v316_v33 = vsel %vm275_vm0, %v315_v29, %v308_v21  ;;  %v298_v34 = vperm.slane %v290_v30, %v3161_v25  ;;  %v326_v35 = vperm.slane %v318_v31, %v3161_v25  ;;  %v3013_v29 = vld [vmem:[%s237_s12] sm:$0xff]  ;;  %v3014_v30 = vld [vmem:[%s237_s12 + $0x8] sm:$0xff]  ;;  %v3015_v31 = vld [vmem:[%s237_s12 + $0x10] sm:$0xff] }
  0x22   : > { %v3170_v36 = vperm.slane %v288_v32, %v3161_v25  ;;  %v3173_v37 = vperm.slane %v316_v33, %v3161_v25  ;;  %v3016_v32 = vld [vmem:[%s237_s12 + $0x18] sm:$0xff] }
  0x23   : > { %v346_v38 = vshrl.u32 %v298_v34, 16  ;;  %v301_v43 = vrot.slane %v298_v34, 4  ;;  %v329_v44 = vrot.slane %v326_v35, 4  ;;  %v347_v45 = vshrl.u32 %v326_v35, 16 }
  0x24   : > { %v334_v39 = vshrl.u32 %v3170_v36, 16  ;;  %v335_v40 = vshrl.u32 %v3173_v37, 16  ;;  %v299_v41 = vrot.slane %v3170_v36, 4  ;;  %v327_v42 = vrot.slane %v3173_v37, 4 }
  0x25   : > { %v348_v53 = vpack.i.b16 %v347_v45, %v346_v38  ;;  %v302_v55 = vsel %vm275_vm0, 0, %v301_v43  ;;  %v330_v56 = vsel %vm275_vm0, 0, %v329_v44  ;;  %v345_v61 = vpack.i.b16 %v326_v35, %v298_v34 }
  0x26   : > { %v336_v46 = vpack.i.b16 %v335_v40, %v334_v39  ;;  %v300_v47 = vsel %vm275_vm0, 0, %v299_v41  ;;  %v328_v48 = vsel %vm275_vm0, 0, %v327_v42  ;;  %v351_v59 = vpack.i.b16 %v330_v56, %v302_v55 }
  0x27   : > { %v340_v49 = vshrl.u32 %v300_v47, 16  ;;  %v341_v50 = vshrl.u32 %v328_v48, 16  ;;  %v339_v52 = vpack.i.b16 %v328_v48, %v300_v47  ;;  %v371_v58 = vunpack.c.l.b16 %v348_v53 }
  0x28   : > { %v355_v51 = vunpack.c.l.b16 %v336_v46  ;;  %v352_v63 = vshrl.u32 %v302_v55, 16  ;;  %v353_v0 = vshrl.u32 %v330_v56, 16  ;;  %v375_v3 = vunpack.c.l.b16 %v351_v59 }
  0x29   : > { %v342_v54 = vpack.i.b16 %v341_v50, %v340_v49  ;;  %v359_v62 = vunpack.c.l.b16 %v339_v52  ;;  %v372_v1 = vpack.c.b16 %v371_v58, %v371_v58  ;;  %v367_v4 = vunpack.c.l.b16 %v345_v61 }
  0x2a   : > { %v356_v57 = vpack.c.b16 %v355_v51, %v355_v51  ;;  %v354_v6 = vpack.i.b16 %v353_v0, %v352_v63  ;;  %v376_v7 = vpack.c.b16 %v375_v3, %v375_v3  ;;  %v333_v15 = vpack.i.b16 %v3173_v37, %v3170_v36 }
  0x2b   : > { %v363_v60 = vunpack.c.l.b16 %v342_v54  ;;  %373 = vrot.lane.b32.xlu2 %v372_v1, %s3093_s28  ;;  %v360_v5 = vpack.c.b16 %v359_v62, %v359_v62  ;;  %v368_v8 = vpack.c.b16 %v367_v4, %v367_v4 }
  0x2c   : > { %357 = vrot.lane.b32.xlu0 %v356_v57, %s3092_s27  ;;  %v379_v9 = vunpack.c.l.b16 %v354_v6 }
  0x2d   : > { %v364_v2 = vpack.c.b16 %v363_v60, %v363_v60 }
  0x2e   : > { %v380_v10 = vpack.c.b16 %v379_v9, %v379_v9 }
  0x2f   : > { %365 = vrot.lane.b32.xlu1 %v364_v2, %s3094_s29 }
  0x33   : > { %377 = vrot.lane.b32.xlu2 %v376_v7, %s3096_s5 }
  0x34   : > { %361 = vrot.lane.b32.xlu0 %v360_v5, %s3095_s30 }
  0x37   : > { %369 = vrot.lane.b32.xlu1 %v368_v8, %s3097_s6 }
  0x3c   : > { %381 = vrot.lane.b32.xlu0 %v380_v10, %s3098_s7 }
  0x85   : > { %v374_v14 = vpop.permute.xlu2 %373 }
  0x8d   : > { %v378_v22 = vpop.permute.xlu2 %377 }
  0x9e   : > { %v358_v12 = vpop.permute.xlu0 %357 }
  0x9f   : > { %v386_v16 = vsel %vm383_vm1, %v333_v15, %v358_v12 }
  0xa1   : > { %v366_v13 = vpop.permute.xlu1 %365 }
  0xa6   : > { %v362_v17 = vpop.permute.xlu0 %361 }
  0xa7   : > { %v389_v18 = vsel %vm387_vm2, %v386_v16, %v362_v17 }
  0xa8   : > { %v392_v19 = vsel %vm390_vm3, %v389_v18, %v366_v13 }
  0xa9   : > { %v370_v20 = vpop.permute.xlu1 %369 }
  0xaa   : > { %v395_v21 = vsel %vm393_vm4, %v392_v19, %v370_v20 }
  0xab   : > { %v398_v23 = vsel %vm396_vm5, %v395_v21, %v374_v14 }
  0xac   : > { %v401_v24 = vsel %vm399_vm6, %v398_v23, %v378_v22 }
  0xae   : > { %v382_v26 = vpop.permute.xlu0 %381 }
  0xaf   : > { %v404_v27 = vsel %vm402_vm7, %v401_v24, %v382_v26 }
  0xb0   : > { %v447_v28 = vsel %vm446_vm8, %v404_v27, 0 }
  0xb1   : > { %456 = vmatpush.bf16.msra.mxu0 %v447_v28 }
  0xb4   : > { %2941 = vmatmul.msk.bf16.vlgmr.msra.gmra.mxu0 %vm433_vm9, %v3013_v29 }
  0xc4   : > { %2942 = vmatmul.msk.bf16.gmra.mxu0 %vm433_vm9, %v3014_v30 }
  0xd4   : > { %2943 = vmatmul.msk.bf16.gmra.mxu0 %vm433_vm9, %v3015_v31 }
  0xe4   : > { %2944 = vmatmul.msk.bf16.gmra.mxu0 %vm433_vm9, %v3016_v32 }
 0x131   : > { %v3206_v33 = vpop.f32.mrf.mxu0 }
 0x132   : > { %486 = vrot.lane.b32.xlu0 %v3206_v33, %s3098_s7  ;;  %606 = vrot.lane.b32.xlu2 %v3206_v33, %s3095_s30  ;;  %v657_v59 = vrot.slane %v3206_v33, 4 }
 0x133   : > { %534 = vrot.lane.b32.xlu1 %v3206_v33, %s3093_s28 }
 0x139   : > { %v3220_v34 = vpop.f32.mrf.mxu0 }
 0x13a   : > { %630 = vrot.lane.b32.xlu0 %v3206_v33, %s3092_s27  ;;  %558 = vrot.lane.b32.xlu2 %v3206_v33, %s3097_s6 }
 0x13b   : > { %510 = vrot.lane.b32.xlu1 %v3206_v33, %s3096_s5 }
 0x141   : > { %v3234_v35 = vpop.f32.mrf.mxu0 }
 0x142   : > { %536 = vrot.lane.b32.xlu0 %v3220_v34, %s3093_s28  ;;  %632 = vrot.lane.b32.xlu2 %v3220_v34, %s3092_s27 }
 0x143   : > { %582 = vrot.lane.b32.xlu1 %v3206_v33, %s3094_s29 }
 0x149   : > { %v3254_v36 = vpop.f32.mrf.mxu0 }
 0x14a   : > { %488 = vrot.lane.b32.xlu0 %v3220_v34, %s3098_s7  ;;  %608 = vrot.lane.b32.xlu2 %v3220_v34, %s3095_s30 }
 0x14b   : > { %584 = vrot.lane.b32.xlu1 %v3220_v34, %s3094_s29 }
 0x151   : > { %v3268_v37 = vpop.f32.mrf.mxu0 }
 0x152   : > { %560 = vrot.lane.b32.xlu2 %v3220_v34, %s3097_s6  ;;  %514 = vrot.lane.b32.xlu0 %v3234_v35, %s3096_s5 }
 0x153   : > { %512 = vrot.lane.b32.xlu1 %v3220_v34, %s3096_s5 }
 0x159   : > { %v3282_v38 = vpop.f32.mrf.mxu0 }
 0x15a   : > { %538 = vrot.lane.b32.xlu2 %v3234_v35, %s3093_s28  ;;  %562 = vrot.lane.b32.xlu0 %v3234_v35, %s3097_s6 }
 0x15b   : > { %610 = vrot.lane.b32.xlu1 %v3234_v35, %s3095_s30 }
 0x161   : > { %v3304_v42 = vpop.f32.mrf.mxu0 }
 0x162   : > { %490 = vrot.lane.b32.xlu2 %v3234_v35, %s3098_s7  ;;  %586 = vrot.lane.b32.xlu0 %v3234_v35, %s3094_s29 }
 0x163   : > { %634 = vrot.lane.b32.xlu1 %v3234_v35, %s3092_s27 }
 0x169   : > { %v3321_v53 = vpop.f32.mrf.mxu0 }
 0x16a   : > { %540 = vrot.lane.b32.xlu0 %v3254_v36, %s3093_s28  ;;  %612 = vrot.lane.b32.xlu2 %v3254_v36, %s3095_s30 }
 0x16b   : > { %516 = vrot.lane.b32.xlu1 %v3254_v36, %s3096_s5 }
 0x172   : > { %492 = vrot.lane.b32.xlu0 %v3254_v36, %s3098_s7  ;;  %636 = vrot.lane.b32.xlu2 %v3254_v36, %s3092_s27 }
 0x173   : > { %564 = vrot.lane.b32.xlu1 %v3254_v36, %s3097_s6 }
 0x17a   : > { %614 = vrot.lane.b32.xlu0 %v3268_v37, %s3095_s30  ;;  %518 = vrot.lane.b32.xlu2 %v3268_v37, %s3096_s5 }
 0x17b   : > { %588 = vrot.lane.b32.xlu1 %v3254_v36, %s3094_s29 }
 0x182   : > { %638 = vrot.lane.b32.xlu0 %v3268_v37, %s3092_s27  ;;  %566 = vrot.lane.b32.xlu2 %v3268_v37, %s3097_s6 }
 0x183   : > { %542 = vrot.lane.b32.xlu1 %v3268_v37, %s3093_s28 }
 0x18a   : > { %590 = vrot.lane.b32.xlu2 %v3268_v37, %s3094_s29  ;;  %520 = vrot.lane.b32.xlu0 %v3282_v38, %s3096_s5 }
 0x18b   : > { %494 = vrot.lane.b32.xlu1 %v3268_v37, %s3098_s7 }
 0x18c   : > { %v607_v39 = vpop.permute.xlu2 %606 }
 0x18d   : > { %v679_v51 = vrot.slane %v607_v39, 4 }
 0x192   : > { %544 = vrot.lane.b32.xlu2 %v3282_v38, %s3093_s28  ;;  %568 = vrot.lane.b32.xlu0 %v3282_v38, %s3097_s6 }
 0x193   : > { %616 = vrot.lane.b32.xlu1 %v3282_v38, %s3095_s30 }
 0x194   : > { %v559_v40 = vpop.permute.xlu2 %558 }
 0x195   : > { %v680_v54 = vsel %vm275_vm0, %v679_v51, %v559_v40  ;;  %v681_v61 = vrot.slane %v559_v40, 4  ;;  %v881_v51 = vrot.slane %v3234_v35, 4 }
 0x196   : > { %v686_v62 = vperm.slane %v680_v54, %v3151_v11 }
 0x197   : > { %v682_v10 = vsel %vm275_vm0, %v607_v39, %v681_v61 }
 0x198   : > { %v729_v12 = vrot.slane %v686_v62, 4  ;;  %v690_v19 = vperm.slane %v682_v10, %v3151_v11 }
 0x19a   : > { %496 = vrot.lane.b32.xlu2 %v3282_v38, %s3098_s7  ;;  %592 = vrot.lane.b32.xlu0 %v3282_v38, %s3094_s29 }
 0x19b   : > { %640 = vrot.lane.b32.xlu1 %v3282_v38, %s3092_s27 }
 0x19c   : > { %v3302_v41 = vpop.permute.xlu2 %632 }
 0x1a2   : > { %546 = vrot.lane.b32.xlu0 %v3304_v42, %s3093_s28  ;;  %618 = vrot.lane.b32.xlu2 %v3304_v42, %s3095_s30 }
 0x1a3   : > { %522 = vrot.lane.b32.xlu1 %v3304_v42, %s3096_s5 }
 0x1a4   : > { %v487_v43 = vpop.permute.xlu0 %486  ;;  %v3312_v45 = vpop.permute.xlu2 %608 }
 0x1a5   : > { %v535_v44 = vpop.permute.xlu1 %534  ;;  %v669_v48 = vrot.slane %v487_v43, 4  ;;  %v791_v23 = vrot.slane %v3312_v45, 4 }
 0x1a6   : > { %v667_v46 = vrot.slane %v535_v44, 4 }
 0x1a7   : > { %v670_v58 = vsel %vm275_vm0, %v535_v44, %v669_v48  ;;  %v741_v48 = vrot.slane %v690_v19, 4 }
 0x1a8   : > { %v668_v49 = vsel %vm275_vm0, %v667_v46, %v487_v43  ;;  %v678_v0 = vperm.slane %v670_v58, %v3151_v11  ;;  %v803_v43 = vrot.slane %v3302_v41, 4 }
 0x1a9   : > { %v674_v55 = vperm.slane %v668_v49, %v3151_v11 }
 0x1aa   : > { %498 = vrot.lane.b32.xlu0 %v3304_v42, %s3098_s7  ;;  %642 = vrot.lane.b32.xlu2 %v3304_v42, %s3092_s27  ;;  %v715_v14 = vrot.slane %v678_v0, 4 }
 0x1ab   : > { %570 = vrot.lane.b32.xlu1 %v3304_v42, %s3097_s6  ;;  %v703_v1 = vrot.slane %v674_v55, 4 }
 0x1ac   : > { %v631_v47 = vpop.permute.xlu0 %630  ;;  %v561_v57 = vpop.permute.xlu2 %560 }
 0x1ad   : > { %v511_v50 = vpop.permute.xlu1 %510  ;;  %v691_v2 = vrot.slane %v631_v47, 4  ;;  %v792_v31 = vsel %vm275_vm0, %v791_v23, %v561_v57  ;;  %v793_v32 = vrot.slane %v561_v57, 4 }
 0x1ae   : > { %v654_v52 = vrot.slane %v511_v50, 4  ;;  %v658_v63 = vsel %vm275_vm0, %v511_v50, %v657_v59 }
 0x1af   : > { %v666_v6 = vperm.slane %v658_v63, %v3151_v11  ;;  %v794_v58 = vsel %vm275_vm0, %v3312_v45, %v793_v32 }
 0x1b0   : > { %v656_v56 = vsel %vm275_vm0, %v654_v52, %v3206_v33  ;;  %v3379_v52 = vperm.slane %v792_v31, %v3151_v11 }
 0x1b1   : > { %v662_v60 = vperm.slane %v656_v56, %v3151_v11  ;;  %v717_v20 = vrot.slane %v666_v6, 4  ;;  %v716_v24 = vsel %vm275_vm0, %v715_v14, %v666_v6  ;;  %v3416_v14 = vld [vmem:[%s3392_s15] sm:$0xf] }
 0x1b2   : > { %524 = vrot.lane.b32.xlu2 %v3321_v53, %s3096_s5  ;;  %620 = vrot.lane.b32.xlu0 %v3321_v53, %s3095_s30  ;;  %v3373_v46 = vperm.slane %v716_v24, %v3161_v25  ;;  %v841_v31 = vrot.slane %v3379_v52, 4 }
 0x1b3   : > { %594 = vrot.lane.b32.xlu1 %v3304_v42, %s3094_s29  ;;  %v705_v4 = vrot.slane %v662_v60, 4  ;;  %v704_v9 = vsel %vm275_vm0, %v703_v1, %v662_v60  ;;  %v718_v44 = vsel %vm275_vm0, %v678_v0, %v717_v20 }
 0x1b4   : > { %v3339_v3 = vpop.permute.xlu0 %536  ;;  %v3348_v17 = vperm.slane %v704_v9, %v3161_v25  ;;  %v3353_v22 = vpop.permute.xlu2 %538  ;;  %v3383_v57 = vperm.slane %v718_v44, %v3161_v25 }
 0x1b5   : > { %v583_v5 = vpop.permute.xlu1 %582  ;;  %v706_v18 = vsel %vm275_vm0, %v674_v55, %v705_v4  ;;  %v779_v45 = vrot.slane %v3339_v3, 4  ;;  %v891_v1 = vrot.slane %v3353_v22, 4 }
 0x1b6   : > { %v692_v7 = vsel %vm275_vm0, %v691_v2, %v583_v5  ;;  %v693_v8 = vrot.slane %v583_v5, 4  ;;  %v714_v30 = vperm.slane %v706_v18, %v3161_v25  ;;  %v753_v40 = vrot.slane %v3348_v17, 4 }
 0x1b7   : > { %v698_v13 = vperm.slane %v692_v7, %v3151_v11 }
 0x1b8   : > { %v694_v21 = vsel %vm275_vm0, %v631_v47, %v693_v8  ;;  %v769_v47 = vrot.slane %v3220_v34, 4  ;;  %v757_v56 = vrot.slane %v714_v30, 4 }
 0x1b9   : > { %v727_v15 = vrot.slane %v698_v13, 4  ;;  %v730_v16 = vsel %vm275_vm0, %v698_v13, %v729_v12  ;;  %v702_v33 = vperm.slane %v694_v21, %v3151_v11 }
 0x1ba   : > { %644 = vrot.lane.b32.xlu0 %v3321_v53, %s3092_s27  ;;  %572 = vrot.lane.b32.xlu2 %v3321_v53, %s3097_s6  ;;  %v738_v26 = vperm.slane %v730_v16, %v3161_v25 }
 0x1bb   : > { %548 = vrot.lane.b32.xlu1 %v3321_v53, %s3093_s28  ;;  %v728_v27 = vsel %vm275_vm0, %v727_v15, %v686_v62  ;;  %v739_v59 = vrot.slane %v702_v33, 4  ;;  %v761_v62 = vrot.slane %v3373_v46, 4  ;;  %v742_v0 = vsel %vm275_vm0, %v702_v33, %v741_v48 }
 0x1bc   : > { %v489_v28 = vpop.permute.xlu0 %488  ;;  %v734_v29 = vperm.slane %v728_v27, %v3161_v25  ;;  %v755_v50 = vrot.slane %v738_v26, 4  ;;  %v758_v63 = vsel %vm275_vm0, %v738_v26, %v757_v56  ;;  %v3407_v6 = vpop.permute.xlu2 %490 }
 0x1bd   : > { %v585_v39 = vpop.permute.xlu1 %584  ;;  %v781_v55 = vrot.slane %v489_v28, 4  ;;  %v740_v13 = vsel %vm275_vm0, %v739_v59, %v690_v19  ;;  %v1554_v15 = vpack.c.bf16 %v758_v63, %v758_v63  ;;  %v780_v24 = vsel %vm275_vm0, %v779_v45, %v489_v28 }
 0x1be   : > { %v754_v49 = vsel %vm275_vm0, %v734_v29, %v753_v40  ;;  %v804_v54 = vsel %vm275_vm0, %v803_v43, %v585_v39  ;;  %v805_v60 = vrot.slane %v585_v39, 4  ;;  %v756_v4 = vsel %vm275_vm0, %v755_v50, %v714_v30 }
 0x1bf   : > { %v1552_v61 = vpack.c.bf16 %v754_v49, %v754_v49  ;;  %v810_v2 = vperm.slane %v804_v54, %v3151_v11  ;;  %v782_v5 = vsel %vm275_vm0, %v3339_v3, %v781_v55  ;;  %v1553_v8 = vpack.c.bf16 %v756_v4, %v756_v4 }
 0x1c0   : > { %v751_v9 = vrot.slane %v734_v29, 4  ;;  %v806_v12 = vsel %vm275_vm0, %v3302_v41, %v805_v60  ;;  %v750_v3 = vperm.slane %v742_v0, %v3161_v25  ;;  %v746_v21 = vperm.slane %v740_v13, %v3161_v25 }
 0x1c1   : > { %v1643_v7 = vsel %vm446_vm8, %v1552_v61, 0  ;;  %v1659_v18 = vsel %vm446_vm8, %v1553_v8, 0  ;;  %v3425_v41 = vperm.slane %v782_v5, %v3151_v11  ;;  %v3429_v27 = vperm.slane %v806_v12, %v3151_v11 }
 0x1c2   : > { %596 = vrot.lane.b32.xlu2 %v3321_v53, %s3094_s29  ;;  %1652 = vmatpush.bf16.msra.mxu2 %v1643_v7  ;;  %v752_v20 = vsel %vm275_vm0, %v751_v9, %v3348_v17  ;;  %v839_v29 = vrot.slane %v810_v2, 4  ;;  %v762_v30 = vsel %vm275_vm0, %v746_v21, %v761_v62  ;;  %v3437_v28 = vperm.slane %v794_v58, %v3151_v11 }
 0x1c3   : > { %500 = vrot.lane.b32.xlu1 %v3321_v53, %s3098_s7  ;;  %1668 = vmatpush.bf16.msra.mxu3 %v1659_v18  ;;  %v1551_v19 = vpack.c.bf16 %v752_v20, %v752_v20  ;;  %v1556_v33 = vpack.c.bf16 %v762_v30, %v762_v30  ;;  %v892_v39 = vsel %vm275_vm0, %v891_v1, %v3407_v6  ;;  %v1675_v40 = vsel %vm446_vm8, %v1554_v15, 0 }
 0x1c4   : > { %v3410_v10 = vpop.permute.xlu0 %514  ;;  %v786_v44 = vperm.slane %v780_v24, %v3151_v11  ;;  %v840_v50 = vsel %vm275_vm0, %v839_v29, %v3379_v52  ;;  %v851_v54 = vrot.slane %v3429_v27, 4  ;;  %v759_v55 = vrot.slane %v746_v21, 4  ;;  %v3472_v45 = vpop.permute.xlu2 %612 }
 0x1c5   : > { %v513_v16 = vpop.permute.xlu1 %512  ;;  %2946 = vmatmul.msk.bf16.vlgmr.msra.gmra.mxu2 %vm433_vm9, %v3416_v14  ;;  %v1627_v32 = vsel %vm446_vm8, %v1551_v19, 0  ;;  %v1707_v48 = vsel %vm446_vm8, %v1556_v33, 0  ;;  %v853_v59 = vrot.slane %v3437_v28, 4  ;;  %v842_v60 = vsel %vm275_vm0, %v810_v2, %v841_v31 }
 0x1c6   : > { %v767_v23 = vrot.slane %v513_v16, 4  ;;  %v770_v26 = vsel %vm275_vm0, %v513_v16, %v769_v47  ;;  %1636 = vmatpush.bf16.msra.mxu1 %v1627_v32  ;;  %2947 = vmatmul.msk.bf16.vlgmr.msra.gmra.mxu3 %vm433_vm9, %v3416_v14  ;;  %v827_v47 = vrot.slane %v3425_v41, 4  ;;  %v893_v61 = vrot.slane %v3407_v6, 4 }
 0x1c7   : > { %v3447_v43 = vperm.slane %v770_v26, %v3151_v11  ;;  %1716 = vmatpush.bf16.msrb.mxu3 %v1707_v48  ;;  %v763_v62 = vrot.slane %v750_v3, 4  ;;  %v3468_v52 = vperm.slane %v892_v39, %v3151_v11  ;;  %v760_v1 = vsel %vm275_vm0, %v759_v55, %v3373_v46 }
 0x1c8   : > { %v768_v17 = vsel %vm275_vm0, %v767_v23, %v3220_v34  ;;  %v765_v34 = vrot.slane %v3383_v57, 4  ;;  %v3477_v4 = vperm.slane %v840_v50, %v3161_v25  ;;  %v1555_v6 = vpack.c.bf16 %v760_v1, %v760_v1 }
 0x1c9   : > { %v774_v49 = vperm.slane %v768_v17, %v3151_v11  ;;  %2945 = vmatmul.msk.bf16.vlgmr.msra.gmra.mxu1 %vm433_vm9, %v3416_v14  ;;  %v828_v0 = vsel %vm275_vm0, %v827_v47, %v3447_v43  ;;  %v764_v7 = vsel %vm275_vm0, %v763_v62, %v3383_v57  ;;  %v850_v8 = vperm.slane %v842_v60, %v3161_v25 }
 0x1ca   : > { %1684 = vmatpush.bf16.msrb.mxu1 %v1675_v40  ;;  %v766_v56 = vsel %vm275_vm0, %v750_v3, %v765_v34  ;;  %v815_v9 = vrot.slane %v786_v44, 4  ;;  %v1557_v12 = vpack.c.bf16 %v764_v7, %v764_v7  ;;  %v852_v13 = vsel %vm275_vm0, %v851_v54, %v3437_v28 }
 0x1cb   : > { %v1558_v2 = vpack.c.bf16 %v766_v56, %v766_v56  ;;  %v817_v5 = vrot.slane %v774_v49, 4  ;;  %v894_v15 = vsel %vm275_vm0, %v3353_v22, %v893_v61  ;;  %v1691_v46 = vsel %vm446_vm8, %v1555_v6, 0 }
 0x1cc   : > { %v3458_v58 = vpop.permute.xlu0 %562  ;;  %v3488_v16 = vperm.slane %v828_v0, %v3161_v25  ;;  %v3491_v3 = vperm.slane %v852_v13, %v3161_v25  ;;  %v879_v57 = vrot.slane %v3410_v10, 4  ;;  %1700 = vmatpush.bf16.msrb.mxu2 %v1691_v46  ;;  %v1723_v20 = vsel %vm446_vm8, %v1557_v12, 0  ;;  %v3518_v56 = vpop.permute.xlu2 %636 }
 0x1cd   : > { %v3465_v63 = vpop.permute.xlu1 %610  ;;  %v1739_v18 = vsel %vm446_vm8, %v1558_v2, 0  ;;  %v816_v21 = vsel %vm275_vm0, %v815_v9, %v774_v49  ;;  %v863_v24 = vrot.slane %v3477_v4, 4  ;;  %v818_v19 = vsel %vm275_vm0, %v786_v44, %v817_v5  ;;  %v3531_v2 = vld [vmem:[%s3392_s15 + $0x4] sm:$0xf] }
 0x1ce   : > { %1732 = vmatpush.bf16.msra.mxu1 %v1723_v20  ;;  %v871_v22 = vrot.slane %v3491_v3, 4  ;;  %v822_v23 = vperm.slane %v816_v21, %v3161_v25  ;;  %v3502_v26 = vperm.slane %v894_v15, %v3151_v11  ;;  %v903_v29 = vrot.slane %v3465_v63, 4 }
 0x1cf   : > { %v826_v30 = vperm.slane %v818_v19, %v3161_v25  ;;  %v867_v17 = vrot.slane %v850_v8, 4  ;;  %v829_v31 = vrot.slane %v3447_v43, 4  ;;  %v854_v49 = vsel %vm275_vm0, %v3429_v27, %v853_v59 }
 0x1d0   : > { %1748 = vmatpush.bf16.msra.mxu2 %v1739_v18  ;;  %v872_v32 = vsel %vm275_vm0, %v871_v22, %v3488_v16  ;;  %v864_v33 = vsel %vm275_vm0, %v863_v24, %v822_v23  ;;  %v880_v50 = vsel %vm275_vm0, %v879_v57, %v3234_v35  ;;  %v904_v55 = vsel %vm275_vm0, %v903_v29, %v3458_v58 }
 0x1d1   : > { %v1563_v34 = vpack.c.bf16 %v872_v32, %v872_v32  ;;  %v1559_v44 = vpack.c.bf16 %v864_v33, %v864_v33  ;;  %v868_v47 = vsel %vm275_vm0, %v867_v17, %v826_v30  ;;  %v830_v59 = vsel %vm275_vm0, %v3425_v41, %v829_v31 }
 0x1d2   : > { %v1561_v43 = vpack.c.bf16 %v868_v47, %v868_v47  ;;  %v905_v62 = vrot.slane %v3458_v58, 4  ;;  %v927_v5 = vrot.slane %v3468_v52, 4  ;;  %v869_v41 = vrot.slane %v826_v30, 4 }
 0x1d3   : > { %v1822_v60 = vsel %vm446_vm8, %v1563_v34, 0  ;;  %v1758_v61 = vsel %vm446_vm8, %v1559_v44, 0  ;;  %v865_v7 = vrot.slane %v822_v23, 4  ;;  %v882_v58 = vsel %vm275_vm0, %v3410_v10, %v881_v51 }
 0x1d4   : > { %v587_v28 = vpop.permute.xlu0 %586  ;;  %1831 = vmatpush.bf16.msrb.mxu0 %v1822_v60  ;;  %1767 = vmatpush.bf16.msra.mxu3 %v1758_v61  ;;  %v1790_v0 = vsel %vm446_vm8, %v1561_v43, 0  ;;  %v910_v9 = vperm.slane %v904_v55, %v3151_v11  ;;  %v862_v13 = vperm.slane %v854_v49, %v3161_v25  ;;  %v886_v15 = vperm.slane %v880_v50, %v3151_v11  ;;  %v3581_v34 = vpop.permute.xlu2 %518 }
 0x1d5   : > { %v635_v39 = vpop.permute.xlu1 %634  ;;  %v917_v40 = vrot.slane %v587_v28, 4  ;;  %2949 = vmatmul.msk.bf16.vlgmr.msrb.gmra.mxu2 %vm433_vm9, %v3416_v14  ;;  %v870_v46 = vsel %vm275_vm0, %v850_v8, %v869_v41  ;;  %v866_v57 = vsel %vm275_vm0, %v3477_v4, %v865_v7  ;;  %v838_v35 = vperm.slane %v830_v59, %v3161_v25 }
 0x1d6   : > { %v915_v48 = vrot.slane %v635_v39, 4  ;;  %2950 = vmatmul.msk.bf16.vlgmr.msrb.gmra.mxu3 %vm433_vm9, %v3416_v14  ;;  %1799 = vmatpush.bf16.msrb.mxu2 %v1790_v0  ;;  %v906_v51 = vsel %vm275_vm0, %v3465_v63, %v905_v62  ;;  %v1562_v20 = vpack.c.bf16 %v870_v46, %v870_v46  ;;  %v1560_v8 = vpack.c.bf16 %v866_v57, %v866_v57 }
 0x1d7   : > { %v918_v54 = vsel %vm275_vm0, %v635_v39, %v917_v40  ;;  %2957 = vmatmul.msk.bf16.vlgmr.msrb.gmra.mxu0 %vm433_vm9, %v3531_v2  ;;  %v939_v23 = vrot.slane %v3502_v26, 4  ;;  %v875_v19 = vrot.slane %v862_v13, 4  ;;  %v3569_v29 = vperm.slane %v882_v58, %v3151_v11 }
 0x1d8   : > { %v916_v27 = vsel %vm275_vm0, %v915_v48, %v587_v28  ;;  %v3537_v6 = vperm.slane %v918_v54, %v3151_v11  ;;  %v1806_v24 = vsel %vm446_vm8, %v1562_v20, 0  ;;  %v1774_v63 = vsel %vm446_vm8, %v1560_v8, 0 }
 0x1d9   : > { %v922_v1 = vperm.slane %v916_v27, %v3151_v11  ;;  %2948 = vmatmul.msk.bf16.vlgmr.msrb.gmra.mxu1 %vm433_vm9, %v3416_v14  ;;  %v3572_v30 = vperm.slane %v906_v51, %v3151_v11  ;;  %1815 = vmatpush.bf16.msrb.mxu3 %v1806_v24  ;;  %v877_v17 = vrot.slane %v838_v35, 4  ;;  %v928_v28 = vsel %vm275_vm0, %v927_v5, %v886_v15 }
 0x1da   : > { %v963_v22 = vrot.slane %v3537_v6, 4  ;;  %1783 = vmatpush.bf16.msrb.mxu1 %v1774_v63  ;;  %v953_v31 = vrot.slane %v910_v9, 4  ;;  %v876_v32 = vsel %vm275_vm0, %v875_v19, %v838_v35  ;;  %v3577_v33 = vperm.slane %v928_v28, %v3161_v25 }
 0x1db   : > { %v951_v12 = vrot.slane %v922_v1, 4  ;;  %v873_v40 = vrot.slane %v3488_v16, 4  ;;  %v878_v47 = vsel %vm275_vm0, %v862_v13, %v877_v17  ;;  %v940_v49 = vsel %vm275_vm0, %v939_v23, %v3569_v29  ;;  %v3610_v13 = vld [vmem:[%s3392_s15 + $0x8] sm:$0xf] }
 0x1dc   : > { %v3551_v18 = vpop.permute.xlu0 %540  ;;  %v964_v44 = vsel %vm275_vm0, %v963_v22, %v3572_v30  ;;  %v1565_v50 = vpack.c.bf16 %v876_v32, %v876_v32  ;;  %v954_v16 = vsel %vm275_vm0, %v922_v1, %v953_v31  ;;  %v929_v27 = vrot.slane %v886_v15, 4  ;;  %v3621_v8 = vpop.permute.xlu2 %566 }
 0x1dd   : > { %v952_v10 = vsel %vm275_vm0, %v951_v12, %v910_v9  ;;  %v3559_v21 = vpop.permute.xlu1 %516  ;;  %v3591_v55 = vperm.slane %v964_v44, %v3161_v25  ;;  %v1003_v60 = vrot.slane %v3551_v18, 4  ;;  %v1566_v59 = vpack.c.bf16 %v878_v47, %v878_v47 }
 0x1de   : > { %v3562_v4 = vperm.slane %v952_v10, %v3161_v25  ;;  %v874_v0 = vsel %vm275_vm0, %v3491_v3, %v873_v40  ;;  %v3599_v5 = vperm.slane %v940_v49, %v3161_v25  ;;  %v962_v7 = vperm.slane %v954_v16, %v3161_v25 }
 0x1df   : > { %v983_v41 = vrot.slane %v3591_v55, 4  ;;  %v1854_v1 = vsel %vm446_vm8, %v1565_v50, 0  ;;  %v1564_v12 = vpack.c.bf16 %v874_v0, %v874_v0  ;;  %v1870_v15 = vsel %vm446_vm8, %v1566_v59, 0 }
 0x1e0   : > { %v975_v39 = vrot.slane %v3562_v4, 4  ;;  %v930_v57 = vsel %vm275_vm0, %v3468_v52, %v929_v27  ;;  %v941_v35 = vrot.slane %v3569_v29, 4  ;;  %v1015_v51 = vrot.slane %v3472_v45, 4 }
 0x1e1   : > { %v984_v3 = vsel %vm275_vm0, %v983_v41, %v3599_v5  ;;  %v991_v10 = vrot.slane %v3559_v21, 4  ;;  %v1027_v20 = vrot.slane %v3518_v56, 4  ;;  %v979_v24 = vrot.slane %v962_v7, 4 }
 0x1e2   : > { %v976_v48 = vsel %vm275_vm0, %v975_v39, %v3577_v33  ;;  %v1571_v46 = vpack.c.bf16 %v984_v3, %v984_v3  ;;  %v1838_v29 = vsel %vm446_vm8, %v1564_v12, 0  ;;  %v938_v28 = vperm.slane %v930_v57, %v3161_v25 }
 0x1e3   : > { %v1567_v54 = vpack.c.bf16 %v976_v48, %v976_v48  ;;  %v942_v40 = vsel %vm275_vm0, %v3502_v26, %v941_v35  ;;  %v993_v44 = vrot.slane %v3254_v36, 4  ;;  %v965_v16 = vrot.slane %v3572_v30, 4 }
 0x1e4   : > { %v493_v43 = vpop.permute.xlu0 %492  ;;  %v1953_v23 = vsel %vm446_vm8, %v1571_v46, 0  ;;  %v977_v0 = vrot.slane %v3577_v33, 4  ;;  %v591_v46 = vpop.permute.xlu2 %590 }
 0x1e5   : > { %v565_v61 = vpop.permute.xlu1 %564  ;;  %v1889_v62 = vsel %vm446_vm8, %v1567_v54, 0  ;;  %2952 = vmatmul.msk.bf16.vlgmr.msra.gmra.mxu2 %vm433_vm9, %v3416_v14  ;;  %v1004_v58 = vsel %vm275_vm0, %v1003_v60, %v493_v43  ;;  %v1005_v9 = vrot.slane %v493_v43, 4  ;;  %v981_v54 = vrot.slane %v938_v28, 4 }
 0x1e6   : > { %1898 = vmatpush.bf16.msra.mxu0 %v1889_v62  ;;  %1863 = vmatpush.bf16.msra.mxu2 %v1854_v1  ;;  %v3624_v22 = vperm.slane %v1004_v58, %v3151_v11  ;;  %v1016_v19 = vsel %vm275_vm0, %v1015_v51, %v565_v61  ;;  %v1017_v31 = vrot.slane %v565_v61, 4  ;;  %v994_v60 = vsel %vm275_vm0, %v3559_v21, %v993_v44 }
 0x1e7   : > { %2953 = vmatmul.msk.bf16.vlgmr.msra.gmra.mxu3 %vm433_vm9, %v3531_v2  ;;  %v1006_v63 = vsel %vm275_vm0, %v3551_v18, %v1005_v9  ;;  %v992_v18 = vsel %vm275_vm0, %v991_v10, %v3254_v36  ;;  %v3652_v49 = vperm.slane %v1016_v19, %v3151_v11  ;;  %v980_v36 = vsel %vm275_vm0, %v979_v24, %v938_v28 }
 0x1e8   : > { %1879 = vmatpush.bf16.msra.mxu3 %v1870_v15  ;;  %v3648_v47 = vperm.slane %v1006_v63, %v3151_v11  ;;  %v1039_v48 = vrot.slane %v3624_v22, 4  ;;  %v3665_v61 = vperm.slane %v992_v18, %v3151_v11  ;;  %v1018_v27 = vsel %vm275_vm0, %v3472_v45, %v1017_v31 }
 0x1e9   : > { %2961 = vmatmul.msk.bf16.vlgmr.msra.gmra.mxu0 %vm433_vm9, %v3610_v13  ;;  %2951 = vmatmul.msk.bf16.vlgmr.msra.gmra.mxu1 %vm433_vm9, %v3416_v14  ;;  %v982_v62 = vsel %vm275_vm0, %v962_v7, %v981_v54  ;;  %v1569_v1 = vpack.c.bf16 %v980_v36, %v980_v36  ;;  %v1103_v45 = vrot.slane %v3581_v34, 4  ;;  %v3682_v9 = vperm.slane %v1018_v27, %v3151_v11 }
 0x1ea   : > { %1962 = vmatpush.bf16.msrb.mxu0 %v1953_v23  ;;  %1847 = vmatpush.bf16.msra.mxu1 %v1838_v29  ;;  %v1040_v30 = vsel %vm275_vm0, %v1039_v48, %v3665_v61  ;;  %v1051_v21 = vrot.slane %v3648_v47, 4  ;;  %v978_v33 = vsel %vm275_vm0, %v3562_v4, %v977_v0  ;;  %v966_v7 = vsel %vm275_vm0, %v3537_v6, %v965_v16 }
 0x1eb   : > { %v3689_v15 = vperm.slane %v994_v60, %v3151_v11  ;;  %v1570_v57 = vpack.c.bf16 %v982_v62, %v982_v62  ;;  %v1141_v51 = vrot.slane %v591_v46, 4  ;;  %v1921_v6 = vsel %vm446_vm8, %v1569_v1, 0 }
 0x1ec   : > { %v3629_v52 = vpop.permute.xlu0 %614  ;;  %v1568_v24 = vpack.c.bf16 %v978_v33, %v978_v33  ;;  %v974_v28 = vperm.slane %v966_v7, %v3161_v25  ;;  %v950_v54 = vperm.slane %v942_v40, %v3161_v25 }
 0x1ed   : > { %v589_v17 = vpop.permute.xlu1 %588  ;;  %v1127_v4 = vrot.slane %v3629_v52, 4  ;;  %v1052_v63 = vsel %vm275_vm0, %v1051_v21, %v3689_v15  ;;  %v1937_v31 = vsel %vm446_vm8, %v1570_v57, 0 }
 0x1ee   : > { %v1028_v32 = vsel %vm275_vm0, %v1027_v20, %v589_v17  ;;  %v1029_v39 = vrot.slane %v589_v17, 4  ;;  %v3694_v20 = vperm.slane %v1040_v30, %v3161_v25  ;;  %v3727_v36 = vperm.slane %v1052_v63, %v3161_v25 }
 0x1ef   : > { %v3645_v14 = vperm.slane %v1028_v32, %v3151_v11  ;;  %v1128_v48 = vsel %vm275_vm0, %v1127_v4, %v3621_v8 }
 0x1f0   : > { %v1030_v50 = vsel %vm275_vm0, %v3518_v56, %v1029_v39  ;;  %v1104_v39 = vsel %vm275_vm0, %v1103_v45, %v3268_v37  ;;  %v3739_v40 = vperm.slane %v1128_v48, %v3151_v11  ;;  %v1129_v45 = vrot.slane %v3621_v8, 4 }
 0x1f1   : > { %v3657_v26 = vperm.slane %v1030_v50, %v3151_v11  ;;  %v1063_v43 = vrot.slane %v3645_v14, 4  ;;  %v1905_v50 = vsel %vm446_vm8, %v1568_v24, 0 }
 0x1f3   : > { %v1064_v56 = vsel %vm275_vm0, %v1063_v43, %v3652_v49  ;;  %v1075_v59 = vrot.slane %v3657_v26, 4 }
 0x1f4   : > { %v3678_v41 = vperm.slane %v1064_v56, %v3161_v25  ;;  %v639_v58 = vpop.permute.xlu0 %638 }
 0x1f5   : > { %v543_v12 = vpop.permute.xlu1 %542  ;;  %v1139_v3 = vrot.slane %v639_v58, 4  ;;  %v1076_v23 = vsel %vm275_vm0, %v1075_v59, %v3682_v9  ;;  %2955 = vmatmul.msk.bf16.vlgmr.msrb.gmra.mxu2 %vm433_vm9, %v3531_v2  ;;  %v1142_v16 = vsel %vm275_vm0, %v639_v58, %v1141_v51  ;;  %v987_v59 = vrot.slane %v974_v28, 4 }
 0x1f6   : > { %v1087_v35 = vrot.slane %v3678_v41, 4  ;;  %1930 = vmatpush.bf16.msrb.mxu2 %v1921_v6  ;;  %v3710_v17 = vperm.slane %v1076_v23, %v3161_v25  ;;  %v1115_v32 = vrot.slane %v543_v12, 4  ;;  %v3745_v58 = vperm.slane %v1104_v39, %v3151_v11 }
 0x1f7   : > { %v1140_v10 = vsel %vm275_vm0, %v1139_v3, %v591_v46  ;;  %2956 = vmatmul.msk.bf16.vlgmr.msrb.gmra.mxu3 %vm433_vm9, %v3531_v2  ;;  %v3749_v3 = vperm.slane %v1142_v16, %v3151_v11  ;;  %v988_v7 = vsel %vm275_vm0, %v987_v59, %v950_v54  ;;  %v989_v46 = vrot.slane %v950_v54, 4  ;;  %v3797_v16 = vld [vmem:[%s3392_s15 + $0xc] sm:$0xf] }
 0x1f8   : > { %v3705_v19 = vperm.slane %v1140_v10, %v3151_v11  ;;  %v1088_v29 = vsel %vm275_vm0, %v1087_v35, %v3694_v20  ;;  %1946 = vmatpush.bf16.msrb.mxu3 %v1937_v31  ;;  %v1095_v44 = vrot.slane %v3710_v17, 4  ;;  %v1065_v51 = vrot.slane %v3652_v49, 4 }
 0x1f9   : > { %v1575_v18 = vpack.c.bf16 %v1088_v29, %v1088_v29  ;;  %2965 = vmatmul.msk.bf16.vlgmr.msrb.gmra.mxu0 %vm433_vm9, %v3610_v13  ;;  %2954 = vmatmul.msk.bf16.vlgmr.msrb.gmra.mxu1 %vm433_vm9, %v3531_v2  ;;  %v990_v23 = vsel %vm275_vm0, %v974_v28, %v989_v46  ;;  %v1573_v4 = vpack.c.bf16 %v988_v7, %v988_v7  ;;  %v985_v6 = vrot.slane %v3599_v5, 4 }
 0x1fa   : > { %v1175_v60 = vrot.slane %v3705_v19, 4  ;;  %1914 = vmatpush.bf16.msrb.mxu1 %v1905_v50  ;;  %v1096_v0 = vsel %vm275_vm0, %v1095_v44, %v3727_v36  ;;  %v1066_v49 = vsel %vm275_vm0, %v3645_v14, %v1065_v51  ;;  %v1187_v29 = vrot.slane %v3749_v3, 4 }
 0x1fb   : > { %v2020_v27 = vsel %vm446_vm8, %v1575_v18, 0  ;;  %v1579_v1 = vpack.c.bf16 %v1096_v0, %v1096_v0  ;;  %v986_v39 = vsel %vm275_vm0, %v3591_v55, %v985_v6  ;;  %v1105_v14 = vrot.slane %v3268_v37, 4 }
 0x1fc   : > { %v3724_v43 = vpop.permute.xlu0 %520  ;;  %2029 = vmatpush.bf16.msra.mxu0 %v2020_v27  ;;  %v1176_v57 = vsel %vm275_vm0, %v1175_v60, %v3739_v40  ;;  %v1985_v48 = vsel %vm446_vm8, %v1573_v4, 0  ;;  %v1074_v54 = vperm.slane %v1066_v49, %v3161_v25  ;;  %v1572_v37 = vpack.c.bf16 %v986_v39, %v986_v39  ;;  %v3801_v27 = vpop.permute.xlu2 %544 }
 0x1fd   : > { %v495_v56 = vpop.permute.xlu1 %494  ;;  %v2084_v35 = vsel %vm446_vm8, %v1579_v1, 0  ;;  %v3766_v63 = vperm.slane %v1176_v57, %v3161_v25  ;;  %v1106_v55 = vsel %vm275_vm0, %v3581_v34, %v1105_v14  ;;  %v1089_v39 = vrot.slane %v3694_v20, 4 }
 0x1fe   : > { %v1116_v62 = vsel %vm275_vm0, %v1115_v32, %v495_v56  ;;  %v1117_v30 = vrot.slane %v495_v56, 4  ;;  %v1574_v32 = vpack.c.bf16 %v990_v23, %v990_v23  ;;  %v3811_v0 = vperm.slane %v1106_v55, %v3151_v11 }
 0x1ff   : > { %v3742_v21 = vperm.slane %v1116_v62, %v3151_v11  ;;  %v1199_v18 = vrot.slane %v3766_v63, 4  ;;  %v1969_v1 = vsel %vm446_vm8, %v1572_v37, 0  ;;  %v1215_v14 = vrot.slane %v3724_v43, 4 }
 0x200   : > { %v1118_v10 = vsel %vm275_vm0, %v543_v12, %v1117_v30  ;;  %2093 = vmatpush.bf16.msrb.mxu0 %v2084_v35  ;;  %v1130_v12 = vsel %vm275_vm0, %v3629_v52, %v1129_v45  ;;  %v1041_v52 = vrot.slane %v3665_v61, 4  ;;  %v2001_v34 = vsel %vm446_vm8, %v1574_v32, 0 }
 0x201   : > { %v1151_v33 = vrot.slane %v3742_v21, 4  ;;  %v3778_v5 = vperm.slane %v1118_v10, %v3151_v11  ;;  %v3786_v44 = vperm.slane %v1130_v12, %v3151_v11  ;;  %v1227_v35 = vrot.slane %v3801_v27, 4 }
 0x202   : > { %v1042_v60 = vsel %vm275_vm0, %v3624_v22, %v1041_v52  ;;  %v1077_v12 = vrot.slane %v3682_v9, 4  ;;  %v1053_v20 = vrot.slane %v3689_v15, 4 }
 0x203   : > { %v1152_v8 = vsel %vm275_vm0, %v1151_v33, %v3745_v58  ;;  %v1188_v56 = vsel %vm275_vm0, %v1187_v29, %v3786_v44  ;;  %v1163_v59 = vrot.slane %v3778_v5, 4  ;;  %v1050_v22 = vperm.slane %v1042_v60, %v3161_v25 }
 0x204   : > { %v3763_v24 = vperm.slane %v1152_v8, %v3161_v25  ;;  %v3775_v28 = vpop.permute.xlu0 %568  ;;  %v3817_v30 = vperm.slane %v1188_v56, %v3161_v25  ;;  %v1091_v33 = vrot.slane %v1074_v54, 4  ;;  %v497_v29 = vpop.permute.xlu2 %496 }
 0x205   : > { %v3773_v31 = vpop.permute.xlu1 %616  ;;  %2959 = vmatmul.msk.bf16.vlgmr.msra.gmra.mxu2 %vm433_vm9, %v3531_v2  ;;  %v1164_v46 = vsel %vm275_vm0, %v1163_v59, %v3811_v0  ;;  %v1216_v59 = vsel %vm275_vm0, %v1215_v14, %v3282_v38 }
 0x206   : > { %v1200_v50 = vsel %vm275_vm0, %v1199_v18, %v3763_v24  ;;  %1994 = vmatpush.bf16.msra.mxu2 %v1985_v48  ;;  %v1239_v51 = vrot.slane %v3773_v31, 4  ;;  %v1092_v8 = vsel %vm275_vm0, %v1091_v33, %v1050_v22  ;;  %v3829_v23 = vperm.slane %v1164_v46, %v3161_v25 }
 0x207   : > { %v1583_v61 = vpack.c.bf16 %v1200_v50, %v1200_v50  ;;  %2960 = vmatmul.msk.bf16.vlgmr.msra.gmra.mxu3 %vm433_vm9, %v3531_v2  ;;  %v1207_v4 = vrot.slane %v3817_v30, 4  ;;  %v1577_v32 = vpack.c.bf16 %v1092_v8, %v1092_v8  ;;  %v1228_v18 = vsel %vm275_vm0, %v1227_v35, %v497_v29 }
 0x208   : > { %2010 = vmatpush.bf16.msra.mxu3 %v2001_v34  ;;  %v1240_v52 = vsel %vm275_vm0, %v1239_v51, %v3775_v28  ;;  %v1078_v50 = vsel %vm275_vm0, %v3657_v26, %v1077_v12  ;;  %v3851_v37 = vperm.slane %v1228_v18, %v3151_v11  ;;  %v1229_v8 = vrot.slane %v497_v29, 4 }
 0x209   : > { %v2151_v62 = vsel %vm446_vm8, %v1583_v61, 0  ;;  %2969 = vmatmul.msk.bf16.vlgmr.msra.gmra.mxu0 %vm433_vm9, %v3797_v16  ;;  %2958 = vmatmul.msk.bf16.vlgmr.msra.gmra.mxu1 %vm433_vm9, %v3531_v2  ;;  %v1093_v2 = vrot.slane %v1050_v22, 4  ;;  %v1208_v48 = vsel %vm275_vm0, %v1207_v4, %v3829_v23  ;;  %v3854_v61 = vperm.slane %v1240_v52, %v3151_v11 }
 0x20a   : > { %2160 = vmatpush.bf16.msra.mxu0 %v2151_v62  ;;  %1978 = vmatpush.bf16.msra.mxu1 %v1969_v1  ;;  %v2052_v60 = vsel %vm446_vm8, %v1577_v32, 0  ;;  %v1587_v56 = vpack.c.bf16 %v1208_v48, %v1208_v48  ;;  %v1086_v15 = vperm.slane %v1078_v50, %v3161_v25  ;;  %v1054_v22 = vsel %vm275_vm0, %v3648_v47, %v1053_v20 }
 0x20b   : > { %v1094_v49 = vsel %vm275_vm0, %v1074_v54, %v1093_v2  ;;  %v1090_v54 = vsel %vm275_vm0, %v3678_v41, %v1089_v39  ;;  %v1263_v33 = vrot.slane %v3851_v37, 4  ;;  %v1177_v18 = vrot.slane %v3739_v40, 4 }
 0x20c   : > { %v593_v57 = vpop.permute.xlu0 %592  ;;  %v1578_v9 = vpack.c.bf16 %v1094_v49, %v1094_v49  ;;  %v1576_v41 = vpack.c.bf16 %v1090_v54, %v1090_v54  ;;  %v2215_v46 = vsel %vm446_vm8, %v1587_v56, 0  ;;  %v1099_v51 = vrot.slane %v1086_v15, 4  ;;  %v3886_v2 = vpop.permute.xlu2 %618 }
 0x20d   : > { %v641_v45 = vpop.permute.xlu1 %640  ;;  %v1253_v1 = vrot.slane %v593_v57, 4  ;;  %v1241_v49 = vrot.slane %v3775_v28, 4  ;;  %v1230_v28 = vsel %vm275_vm0, %v3801_v27, %v1229_v8  ;;  %v1097_v50 = vrot.slane %v3727_v36, 4 }
 0x20e   : > { %v1251_v7 = vrot.slane %v641_v45, 4  ;;  %v2068_v62 = vsel %vm446_vm8, %v1578_v9, 0  ;;  %v2036_v47 = vsel %vm446_vm8, %v1576_v41, 0  ;;  %v1178_v54 = vsel %vm275_vm0, %v3705_v19, %v1177_v18 }
 0x20f   : > { %v1242_v40 = vsel %vm275_vm0, %v3773_v31, %v1241_v49  ;;  %v1098_v27 = vsel %vm275_vm0, %v3710_v17, %v1097_v50  ;;  %v3917_v36 = vperm.slane %v1230_v28, %v3151_v11  ;;  %v1201_v50 = vrot.slane %v3763_v24, 4 }
 0x210   : > { %v1252_v10 = vsel %vm275_vm0, %v1251_v7, %v593_v57  ;;  %v3873_v7 = vperm.slane %v1216_v59, %v3151_v11  ;;  %v1062_v57 = vperm.slane %v1054_v22, %v3161_v25  ;;  %v3923_v56 = vperm.slane %v1242_v40, %v3151_v11 }
 0x211   : > { %v3833_v6 = vperm.slane %v1252_v10, %v3151_v11  ;;  %v1254_v10 = vsel %vm275_vm0, %v641_v45, %v1253_v1 }
 0x212   : > { %v1264_v4 = vsel %vm275_vm0, %v1263_v33, %v3873_v7  ;;  %v1100_v12 = vsel %vm275_vm0, %v1099_v51, %v1062_v57  ;;  %v1101_v32 = vrot.slane %v1062_v57, 4  ;;  %v3895_v14 = vperm.slane %v1254_v10, %v3151_v11 }
 0x213   : > { %v1287_v55 = vrot.slane %v3833_v6, 4  ;;  %v3901_v29 = vperm.slane %v1264_v4, %v3161_v25  ;;  %v1581_v48 = vpack.c.bf16 %v1100_v12, %v1100_v12  ;;  %v1275_v33 = vrot.slane %v3917_v36, 4 }
 0x214   : > { %v1102_v45 = vsel %vm275_vm0, %v1086_v15, %v1101_v32  ;;  %v1299_v20 = vrot.slane %v3895_v14, 4  ;;  %v3925_v59 = vpop.permute.xlu0 %546  ;;  %v1580_v15 = vpack.c.bf16 %v1098_v27, %v1098_v27  ;;  %v1351_v32 = vrot.slane %v3886_v2, 4 }
 0x215   : > { %2963 = vmatmul.msk.bf16.vlgmr.msrb.gmra.mxu2 %vm433_vm9, %v3610_v13  ;;  %v3859_v26 = vpop.permute.xlu1 %522  ;;  %v1288_v34 = vsel %vm275_vm0, %v1287_v55, %v3854_v61  ;;  %v1153_v55 = vrot.slane %v3745_v58, 4  ;;  %v1217_v58 = vrot.slane %v3282_v38, 4  ;;  %v2116_v19 = vsel %vm446_vm8, %v1581_v48, 0  ;;  %v3933_v38 = vld [vmem:[%s3392_s15 + $0x10] sm:$0xf] }
 0x216   : > { %2061 = vmatpush.bf16.msrb.mxu2 %v2052_v60  ;;  %v3879_v35 = vperm.slane %v1288_v34, %v3161_v25  ;;  %v1582_v60 = vpack.c.bf16 %v1102_v45, %v1102_v45  ;;  %v3936_v34 = vpop.permute.xlu2 %642  ;;  %v1300_v22 = vsel %vm275_vm0, %v1299_v20, %v3923_v56  ;;  %v2100_v51 = vsel %vm446_vm8, %v1580_v15, 0 }
 0x217   : > { %2964 = vmatmul.msk.bf16.vlgmr.msrb.gmra.mxu3 %vm433_vm9, %v3610_v13  ;;  %v1154_v31 = vsel %vm275_vm0, %v3742_v21, %v1153_v55  ;;  %v1218_v17 = vsel %vm275_vm0, %v3724_v43, %v1217_v58  ;;  %v1186_v21 = vperm.slane %v1178_v54, %v3161_v25  ;;  %v1363_v43 = vrot.slane %v3936_v34, 4 }
 0x218   : > { %2077 = vmatpush.bf16.msrb.mxu3 %v2068_v62  ;;  %v1311_v39 = vrot.slane %v3879_v35, 4  ;;  %v2132_v62 = vsel %vm446_vm8, %v1582_v60, 0  ;;  %v1162_v1 = vperm.slane %v1154_v31, %v3161_v25  ;;  %v3956_v8 = vperm.slane %v1300_v22, %v3161_v25 }
 0x219   : > { %2973 = vmatmul.msk.bf16.vlgmr.msrb.gmra.mxu0 %vm433_vm9, %v3797_v16  ;;  %2962 = vmatmul.msk.bf16.vlgmr.msrb.gmra.mxu1 %vm433_vm9, %v3610_v13  ;;  %v1203_v10 = vrot.slane %v1186_v21, 4  ;;  %v1189_v45 = vrot.slane %v3786_v44, 4  ;;  %v1165_v54 = vrot.slane %v3811_v0, 4  ;;  %v1202_v31 = vsel %vm275_vm0, %v3766_v63, %v1201_v50 }
 0x21a   : > { %2224 = vmatpush.bf16.msrb.mxu0 %v2215_v46  ;;  %2045 = vmatpush.bf16.msrb.mxu1 %v2036_v47  ;;  %v1312_v9 = vsel %vm275_vm0, %v1311_v39, %v3901_v29  ;;  %v3947_v46 = vperm.slane %v1218_v17, %v3151_v11  ;;  %v1205_v49 = vrot.slane %v1162_v1, 4  ;;  %v1339_v39 = vrot.slane %v3925_v59, 4 }
 0x21b   : > { %v1591_v41 = vpack.c.bf16 %v1312_v9, %v1312_v9  ;;  %v1319_v18 = vrot.slane %v3956_v8, 4  ;;  %v1190_v27 = vsel %vm275_vm0, %v3749_v3, %v1189_v45  ;;  %v1166_v0 = vsel %vm275_vm0, %v3778_v5, %v1165_v54 }
 0x21c   : > { %v1276_v12 = vsel %vm275_vm0, %v1275_v33, %v3947_v46  ;;  %v499_v28 = vpop.permute.xlu0 %498  ;;  %v1206_v40 = vsel %vm275_vm0, %v1186_v21, %v1205_v49  ;;  %v1198_v21 = vperm.slane %v1190_v27, %v3161_v25  ;;  %v1584_v63 = vpack.c.bf16 %v1202_v31, %v1202_v31 }
 0x21d   : > { %v3897_v52 = vpop.permute.xlu1 %570  ;;  %v2282_v57 = vsel %vm446_vm8, %v1591_v41, 0  ;;  %v3971_v55 = vperm.slane %v1276_v12, %v3161_v25  ;;  %v1340_v20 = vsel %vm275_vm0, %v1339_v39, %v499_v28  ;;  %v1586_v58 = vpack.c.bf16 %v1206_v40, %v1206_v40 }
 0x21e   : > { %v1352_v60 = vsel %vm275_vm0, %v1351_v32, %v3897_v52  ;;  %v3989_v41 = vperm.slane %v1340_v20, %v3151_v11  ;;  %v1174_v33 = vperm.slane %v1166_v0, %v3161_v25  ;;  %v1353_v45 = vrot.slane %v3897_v52, 4 }
 0x21f   : > { %v1320_v44 = vsel %vm275_vm0, %v1319_v18, %v3971_v55  ;;  %v3992_v17 = vperm.slane %v1352_v60, %v3151_v11  ;;  %v2199_v22 = vsel %vm446_vm8, %v1586_v58, 0  ;;  %v1341_v18 = vrot.slane %v499_v28, 4 }
 0x220   : > { %v1595_v15 = vpack.c.bf16 %v1320_v44, %v1320_v44  ;;  %v1213_v39 = vrot.slane %v1174_v33, 4  ;;  %v1265_v44 = vrot.slane %v3873_v7, 4 }
 0x221   : > { %v1342_v27 = vsel %vm275_vm0, %v3925_v59, %v1341_v18 }
 0x222   : > { %v1214_v60 = vsel %vm275_vm0, %v1198_v21, %v1213_v39  ;;  %v4057_v59 = vperm.slane %v1342_v27, %v3151_v11 }
 0x224   : > { %v4021_v12 = vpop.permute.xlu0 %620 }
 0x225   : > { %2967 = vmatmul.msk.bf16.vlgmr.msra.gmra.mxu2 %vm433_vm9, %v3610_v13  ;;  %v595_v47 = vpop.permute.xlu1 %594 }
 0x226   : > { %2125 = vmatpush.bf16.msra.mxu2 %v2116_v19  ;;  %v1364_v4 = vsel %vm275_vm0, %v1363_v43, %v595_v47  ;;  %v1327_v19 = vrot.slane %v3859_v26, 4  ;;  %v1365_v43 = vrot.slane %v595_v47, 4  ;;  %v1211_v47 = vrot.slane %v1198_v21, 4 }
 0x227   : > { %2968 = vmatmul.msk.bf16.vlgmr.msra.gmra.mxu3 %vm433_vm9, %v3610_v13  ;;  %v3967_v48 = vperm.slane %v1364_v4, %v3151_v11  ;;  %v2167_v4 = vsel %vm446_vm8, %v1584_v63, 0  ;;  %v1329_v21 = vrot.slane %v3304_v42, 4  ;;  %v4070_v63 = vld [vmem:[%s3392_s15 + $0x14] sm:$0xf] }
 0x228   : > { %2141 = vmatpush.bf16.msra.mxu3 %v2132_v62  ;;  %v3998_v62 = vpop.permute.xlu2 %524  ;;  %v1366_v32 = vsel %vm275_vm0, %v3936_v34, %v1365_v43  ;;  %v1212_v50 = vsel %vm275_vm0, %v1211_v47, %v1174_v33  ;;  %v1209_v34 = vrot.slane %v3829_v23, 4 }
 0x229   : > { %2977 = vmatmul.msk.bf16.vlgmr.msra.gmra.mxu0 %vm433_vm9, %v3933_v38  ;;  %2966 = vmatmul.msk.bf16.vlgmr.msra.gmra.mxu1 %vm433_vm9, %v3610_v13  ;;  %v1204_v13 = vsel %vm275_vm0, %v1203_v10, %v1162_v1  ;;  %v1399_v24 = vrot.slane %v3967_v48, 4  ;;  %v1328_v1 = vsel %vm275_vm0, %v1327_v19, %v3304_v42  ;;  %v4032_v54 = vperm.slane %v1366_v32, %v3151_v11 }
 0x22a   : > { %2291 = vmatpush.bf16.msra.mxu0 %v2282_v57  ;;  %2109 = vmatpush.bf16.msra.mxu1 %v2100_v51  ;;  %v1585_v9 = vpack.c.bf16 %v1204_v13, %v1204_v13  ;;  %v1375_v57 = vrot.slane %v3989_v41, 4  ;;  %v2346_v51 = vsel %vm446_vm8, %v1595_v15, 0  ;;  %v4019_v49 = vperm.slane %v1328_v1, %v3151_v11 }
 0x22b   : > { %v1400_v5 = vsel %vm275_vm0, %v1399_v24, %v3992_v17  ;;  %v1589_v52 = vpack.c.bf16 %v1212_v50, %v1212_v50  ;;  %v1411_v58 = vrot.slane %v4032_v54, 4  ;;  %v1590_v19 = vpack.c.bf16 %v1214_v60, %v1214_v60 }
 0x22c   : > { %v2183_v3 = vsel %vm446_vm8, %v1585_v9, 0  ;;  %v4013_v10 = vperm.slane %v1400_v5, %v3161_v25  ;;  %v1376_v13 = vsel %vm275_vm0, %v1375_v57, %v4019_v49  ;;  %v1289_v9 = vrot.slane %v3854_v61, 4  ;;  %v4062_v0 = vpop.permute.xlu0 %644 }
 0x22d   : > { %v4039_v28 = vperm.slane %v1376_v13, %v3161_v25  ;;  %v1354_v61 = vsel %vm275_vm0, %v3886_v2, %v1353_v45  ;;  %v4051_v31 = vpop.permute.xlu1 %548  ;;  %v1210_v7 = vsel %vm275_vm0, %v3817_v30, %v1209_v34  ;;  %v1266_v42 = vsel %vm275_vm0, %v3851_v37, %v1265_v44 }
 0x22e   : > { %v1423_v40 = vrot.slane %v4013_v10, 4  ;;  %v1290_v23 = vsel %vm275_vm0, %v3833_v6, %v1289_v9  ;;  %v4060_v2 = vperm.slane %v1354_v61, %v3151_v11  ;;  %v2247_v6 = vsel %vm446_vm8, %v1589_v52, 0 }
 0x22f   : > { %v1298_v15 = vperm.slane %v1290_v23, %v3161_v25  ;;  %v1588_v30 = vpack.c.bf16 %v1210_v7, %v1210_v7  ;;  %v1330_v43 = vsel %vm275_vm0, %v3859_v26, %v1329_v21  ;;  %v1475_v33 = vrot.slane %v4062_v0, 4 }
 0x230   : > { %v4034_v20 = vpop.permute.xlu2 %572  ;;  %v1424_v24 = vsel %vm275_vm0, %v1423_v40, %v4039_v28  ;;  %v1412_v1 = vsel %vm275_vm0, %v1411_v58, %v4060_v2  ;;  %v1274_v13 = vperm.slane %v1266_v42, %v3161_v25  ;;  %v4103_v50 = vperm.slane %v1330_v43, %v3151_v11 }
 0x231   : > { %v2231_v26 = vsel %vm446_vm8, %v1588_v30, 0  ;;  %v1315_v18 = vrot.slane %v1298_v15, 4  ;;  %v4100_v45 = vperm.slane %v1412_v1, %v3161_v25  ;;  %v1451_v9 = vrot.slane %v4051_v31, 4 }
 0x232   : > { %v1301_v34 = vrot.slane %v3923_v56, 4  ;;  %v1463_v44 = vrot.slane %v4021_v12, 4  ;;  %v1317_v61 = vrot.slane %v1274_v13, 4  ;;  %v1313_v30 = vrot.slane %v3901_v29, 4 }
 0x233   : > { %v1316_v27 = vsel %vm275_vm0, %v1315_v18, %v1274_v13 }
 0x234   : > { %v1318_v7 = vsel %vm275_vm0, %v1298_v15, %v1317_v61  ;;  %v1593_v21 = vpack.c.bf16 %v1316_v27, %v1316_v27  ;;  %v1464_v42 = vsel %vm275_vm0, %v1463_v44, %v4034_v20  ;;  %v1314_v29 = vsel %vm275_vm0, %v3879_v35, %v1313_v30 }
 0x235   : > { %2971 = vmatmul.msk.bf16.vlgmr.msrb.gmra.mxu2 %vm433_vm9, %v3797_v16  ;;  %v4111_v60 = vpop.permute.xlu1 %500 }
 0x236   : > { %2192 = vmatpush.bf16.msrb.mxu2 %v2183_v3  ;;  %v1599_v3 = vpack.c.bf16 %v1424_v24, %v1424_v24  ;;  %v1431_v24 = vrot.slane %v4100_v45, 4  ;;  %v1452_v56 = vsel %vm275_vm0, %v1451_v9, %v4111_v60 }
 0x237   : > { %2972 = vmatmul.msk.bf16.vlgmr.msrb.gmra.mxu3 %vm433_vm9, %v3797_v16 }
 0x238   : > { %2208 = vmatpush.bf16.msrb.mxu3 %v2199_v22  ;;  %v2263_v22 = vsel %vm446_vm8, %v1590_v19, 0  ;;  %v4088_v47 = vpop.permute.xlu2 %596  ;;  %v2413_v37 = vsel %vm446_vm8, %v1599_v3, 0  ;;  %v1277_v3 = vrot.slane %v3947_v46, 4  ;;  %v1594_v46 = vpack.c.bf16 %v1318_v7, %v1318_v7 }
 0x239   : > { %2981 = vmatmul.msk.bf16.vlgmr.msrb.gmra.mxu0 %vm433_vm9, %v3933_v38  ;;  %2970 = vmatmul.msk.bf16.vlgmr.msrb.gmra.mxu1 %vm433_vm9, %v3797_v16  ;;  %v1401_v7 = vrot.slane %v3992_v17, 4 }
 0x23a   : > { %2355 = vmatpush.bf16.msrb.mxu0 %v2346_v51  ;;  %2176 = vmatpush.bf16.msrb.mxu1 %v2167_v4  ;;  %v1387_v4 = vrot.slane %v4057_v59, 4  ;;  %v1278_v35 = vsel %vm275_vm0, %v3917_v36, %v1277_v3  ;;  %v2330_v18 = vsel %vm446_vm8, %v1594_v46, 0  ;;  %v1465_v3 = vrot.slane %v4034_v20, 4 }
 0x23b   : > { %v1402_v46 = vsel %vm275_vm0, %v3967_v48, %v1401_v7 }
 0x23c   : > { %v1388_v52 = vsel %vm275_vm0, %v1387_v4, %v4103_v50 }
 0x245   : > { %2975 = vmatmul.msk.bf16.vlgmr.msra.gmra.mxu2 %vm433_vm9, %v3797_v16 }
 0x246   : > { %2256 = vmatpush.bf16.msra.mxu2 %v2247_v6  ;;  %v1638_v5 = vpop.f32.mrf.mxu1  ;;  %v4127_v6 = vperm.slane %v1388_v52, %v3161_v25 }
 0x247   : > { %2976 = vmatmul.msk.bf16.vlgmr.msra.gmra.mxu3 %vm433_vm9, %v3797_v16  ;;  %v2671_v57 = vpack.c.bf16 %v1638_v5, %v1638_v5  ;;  %v1302_v5 = vsel %vm275_vm0, %v3895_v14, %v1301_v34  ;;  %v4145_v14 = vperm.slane %v1464_v42, %v3151_v11 }
 0x248   : > { %2272 = vmatpush.bf16.msra.mxu3 %v2263_v22  ;;  %v1654_v51 = vpop.f32.mrf.mxu2  ;;  %v1439_v22 = vrot.slane %v3998_v62, 4  ;;  %v1432_v15 = vsel %vm275_vm0, %v1431_v24, %v4127_v6 }
 0x249   : > { %v2672_v32 = vpack.c.bf16 %v1654_v51, %v1654_v51  ;;  %2985 = vmatmul.msk.bf16.vlgmr.msra.gmra.mxu0 %vm433_vm9, %v4070_v63  ;;  %2736 = vst.msk [vmem:[%s4075_s19] sm:$0xf] %vm2735_vm10, %v2671_v57  ;;  %2974 = vmatmul.msk.bf16.vlgmr.msra.gmra.mxu1 %vm433_vm9, %v3797_v16  ;;  %v1670_v39 = vpop.f32.mrf.mxu3  ;;  %v1476_v16 = vsel %vm275_vm0, %v1475_v33, %v4088_v47  ;;  %v1477_v57 = vrot.slane %v4088_v47, 4  ;;  %v2314_v51 = vsel %vm446_vm8, %v1593_v21, 0 }
 0x24a   : > { %2422 = vmatpush.bf16.msra.mxu0 %v2413_v37  ;;  %2240 = vmatpush.bf16.msra.mxu1 %v2231_v26  ;;  %v2673_v40 = vpack.c.bf16 %v1670_v39, %v1670_v39  ;;  %v4121_v23 = vperm.slane %v1476_v16, %v3151_v11  ;;  %v4140_v33 = vperm.slane %v1452_v56, %v3151_v11 }
 0x24b   : > { %2737 = vst.msk [vmem:[%s4075_s19 + $0x4] sm:$0xf] %vm2735_vm10, %v2672_v32  ;;  %v1603_v4 = vpack.c.bf16 %v1432_v15, %v1432_v15  ;;  %v1440_v32 = vsel %vm275_vm0, %v1439_v22, %v3321_v53  ;;  %v1592_v37 = vpack.c.bf16 %v1314_v29, %v1314_v29  ;;  %v1310_v26 = vperm.slane %v1302_v5, %v3161_v25 }
 0x24c   : > { %2738 = vst.msk [vmem:[%s4075_s19 + $0x8] sm:$0xf] %vm2735_vm10, %v2673_v40  ;;  %v1511_v43 = vrot.slane %v4121_v23, 4  ;;  %v1487_v39 = vrot.slane %v4140_v33, 4  ;;  %v4163_v16 = vperm.slane %v1440_v32, %v3151_v11  ;;  %v1478_v36 = vsel %vm275_vm0, %v4062_v0, %v1477_v57 }
 0x24d   : > { %v2477_v52 = vsel %vm446_vm8, %v1603_v4, 0  ;;  %v2298_v27 = vsel %vm446_vm8, %v1592_v37, 0  ;;  %v1286_v0 = vperm.slane %v1278_v35, %v3161_v25  ;;  %v1323_v24 = vrot.slane %v1310_v26, 4 }
 0x24e   : > { %v1640_v58 = vpop.f32.mrf.mxu1  ;;  %v1512_v47 = vsel %vm275_vm0, %v1511_v43, %v4145_v14  ;;  %v4187_v21 = vperm.slane %v1478_v36, %v3151_v11  ;;  %v1321_v43 = vrot.slane %v3971_v55, 4  ;;  %v1466_v29 = vsel %vm275_vm0, %v4021_v12, %v1465_v3 }
 0x24f   : > { %v4171_v44 = vperm.slane %v1512_v47, %v3161_v25  ;;  %v1488_v58 = vsel %vm275_vm0, %v1487_v39, %v4163_v16  ;;  %v1324_v30 = vsel %vm275_vm0, %v1323_v24, %v1286_v0  ;;  %v1325_v5 = vrot.slane %v1286_v0, 4 }
 0x250   : > { %v1656_v19 = vpop.f32.mrf.mxu2  ;;  %v4193_v22 = vperm.slane %v1488_v58, %v3161_v25  ;;  %v1597_v15 = vpack.c.bf16 %v1324_v30, %v1324_v30  ;;  %v1523_v57 = vrot.slane %v4187_v21, 4  ;;  %v1322_v55 = vsel %vm275_vm0, %v3956_v8, %v1321_v43 }
 0x251   : > { %v1672_v1 = vpop.f32.mrf.mxu3  ;;  %v1453_v19 = vrot.slane %v4111_v60, 4  ;;  %v1535_v42 = vrot.slane %v4171_v44, 4  ;;  %v1326_v20 = vsel %vm275_vm0, %v1310_v26, %v1325_v5  ;;  %v1441_v26 = vrot.slane %v3321_v53, 4 }
 0x252   : > { %v1598_v37 = vpack.c.bf16 %v1326_v20, %v1326_v20  ;;  %v1377_v12 = vrot.slane %v4019_v49, 4  ;;  %v4215_v35 = vperm.slane %v1466_v29, %v3151_v11  ;;  %v2378_v47 = vsel %vm446_vm8, %v1597_v15, 0  ;;  %v4226_v49 = vld [vmem:[%s3392_s15 + $0x18] sm:$0xf] }
 0x253   : > { %v1454_v60 = vsel %vm275_vm0, %v4051_v31, %v1453_v19  ;;  %v1536_v4 = vsel %vm275_vm0, %v1535_v42, %v4193_v22  ;;  %v1410_v8 = vperm.slane %v1402_v46, %v3161_v25  ;;  %v1596_v53 = vpack.c.bf16 %v1322_v55, %v1322_v55 }
 0x254   : > { %v1833_v31 = vpop.f32.mrf.mxu0  ;;  %v4208_v32 = vperm.slane %v1454_v60, %v3151_v11  ;;  %v1607_v39 = vpack.c.bf16 %v1536_v4, %v1536_v4  ;;  %v1425_v43 = vrot.slane %v4039_v28, 4 }
 0x255   : > { %2979 = vmatmul.msk.bf16.vlgmr.msrb.gmra.mxu2 %vm433_vm9, %v3933_v38  ;;  %v2683_v48 = vpack.c.bf16 %v1833_v31, %v1833_v31  ;;  %v2362_v24 = vsel %vm446_vm8, %v1596_v53, 0 }
 0x256   : > { %2323 = vmatpush.bf16.msrb.mxu2 %v2314_v51  ;;  %v1686_v13 = vpop.f32.mrf.mxu1 }
 0x257   : > { %2980 = vmatmul.msk.bf16.vlgmr.msrb.gmra.mxu3 %vm433_vm9, %v3933_v38  ;;  %v2674_v40 = vpack.c.bf16 %v1686_v13, %v1686_v13  ;;  %2748 = vst.msk [vmem:[%s4075_s19 + $0x30] sm:$0xf] %vm2735_vm10, %v2683_v48  ;;  %v1442_v13 = vsel %vm275_vm0, %v3998_v62, %v1441_v26  ;;  %v2394_v62 = vsel %vm446_vm8, %v1598_v37, 0  ;;  %v1389_v37 = vrot.slane %v4103_v50, 4 }
 0x258   : > { %2339 = vmatpush.bf16.msrb.mxu3 %v2330_v18  ;;  %v1702_v9 = vpop.f32.mrf.mxu2  ;;  %v1378_v18 = vsel %vm275_vm0, %v3989_v41, %v1377_v12  ;;  %v2544_v41 = vsel %vm446_vm8, %v1607_v39, 0 }
 0x259   : > { %v2675_v34 = vpack.c.bf16 %v1702_v9, %v1702_v9  ;;  %2989 = vmatmul.msk.bf16.vlgmr.msrb.gmra.mxu0 %vm433_vm9, %v4070_v63  ;;  %2739 = vst.msk [vmem:[%s4075_s19 + $0xc] sm:$0xf] %vm2735_vm10, %v2674_v40  ;;  %2978 = vmatmul.msk.bf16.vlgmr.msrb.gmra.mxu1 %vm433_vm9, %v3933_v38  ;;  %v1718_v61 = vpop.f32.mrf.mxu3  ;;  %v1524_v40 = vsel %vm275_vm0, %v1523_v57, %v4215_v35  ;;  %v1499_v9 = vrot.slane %v4208_v32, 4 }
 0x25a   : > { %2486 = vmatpush.bf16.msrb.mxu0 %v2477_v52  ;;  %2307 = vmatpush.bf16.msrb.mxu1 %v2298_v27  ;;  %v2676_v56 = vpack.c.bf16 %v1718_v61, %v1718_v61  ;;  %v4237_v27 = vperm.slane %v1442_v13, %v3151_v11  ;;  %v1386_v0 = vperm.slane %v1378_v18, %v3161_v25  ;;  %v1427_v11 = vrot.slane %v1410_v8, 4 }
 0x25b   : > { %2740 = vst.msk [vmem:[%s4075_s19 + $0x10] sm:$0xf] %vm2735_vm10, %v2675_v34  ;;  %v1390_v50 = vsel %vm275_vm0, %v4057_v59, %v1389_v37 }
 0x25c   : > { %2741 = vst.msk [vmem:[%s4075_s19 + $0x14] sm:$0xf] %vm2735_vm10, %v2676_v56  ;;  %v4249_v56 = vperm.slane %v1524_v40, %v3161_v25  ;;  %v1835_v19 = vpop.f32.mrf.mxu0  ;;  %v1500_v3 = vsel %vm275_vm0, %v1499_v9, %v4237_v27  ;;  %v1429_v30 = vrot.slane %v1386_v0, 4  ;;  %v1398_v59 = vperm.slane %v1390_v50, %v3161_v25 }
 0x25d   : > { %v4259_v5 = vperm.slane %v1500_v3, %v3161_v25 }
 0x25e   : > { %v1688_v1 = vpop.f32.mrf.mxu1  ;;  %v1543_v42 = vrot.slane %v4249_v56, 4  ;;  %v1430_v20 = vsel %vm275_vm0, %v1410_v8, %v1429_v30 }
 0x25f   : > { %v1413_v1 = vrot.slane %v4060_v2, 4  ;;  %v1602_v4 = vpack.c.bf16 %v1430_v20, %v1430_v20  ;;  %v1426_v2 = vsel %vm275_vm0, %v4013_v10, %v1425_v43 }
 0x260   : > { %v1704_v17 = vpop.f32.mrf.mxu2  ;;  %v1544_v29 = vsel %vm275_vm0, %v1543_v42, %v4259_v5  ;;  %v1600_v48 = vpack.c.bf16 %v1426_v2, %v1426_v2 }
 0x261   : > { %v1720_v51 = vpop.f32.mrf.mxu3  ;;  %v1611_v55 = vpack.c.bf16 %v1544_v29, %v1544_v29  ;;  %v2461_v10 = vsel %vm446_vm8, %v1602_v4, 0  ;;  %v1525_v4 = vrot.slane %v4215_v35, 4 }
 0x262   : > { %v1414_v51 = vsel %vm275_vm0, %v4032_v54, %v1413_v1  ;;  %v2429_v8 = vsel %vm446_vm8, %v1600_v48, 0 }
 0x263   : > { %v1422_v54 = vperm.slane %v1414_v51, %v3161_v25  ;;  %v2608_v13 = vsel %vm446_vm8, %v1611_v55, 0  ;;  %v1501_v55 = vrot.slane %v4237_v27, 4 }
 0x265   : > { %2983 = vmatmul.msk.bf16.vlgmr.msra.gmra.mxu2 %vm433_vm9, %v3933_v38  ;;  %v1435_v18 = vrot.slane %v1422_v54, 4 }
 0x266   : > { %2387 = vmatpush.bf16.msra.mxu2 %v2378_v47  ;;  %v1734_v36 = vpop.f32.mrf.mxu1  ;;  %v1900_v57 = vpop.f32.mrf.mxu0 }
 0x267   : > { %2984 = vmatmul.msk.bf16.vlgmr.msra.gmra.mxu3 %vm433_vm9, %v3933_v38  ;;  %v2677_v34 = vpack.c.bf16 %v1734_v36, %v1734_v36  ;;  %v2687_v31 = vpack.c.bf16 %v1900_v57, %v1900_v57  ;;  %v1436_v36 = vsel %vm275_vm0, %v1435_v18, %v1398_v59 }
 0x268   : > { %2403 = vmatpush.bf16.msra.mxu3 %v2394_v62  ;;  %v1750_v52 = vpop.f32.mrf.mxu2  ;;  %v1437_v62 = vrot.slane %v1398_v59, 4 }
 0x269   : > { %v2678_v61 = vpack.c.bf16 %v1750_v52, %v1750_v52  ;;  %2993 = vmatmul.msk.bf16.vlgmr.msra.gmra.mxu0 %vm433_vm9, %v4226_v49  ;;  %2742 = vst.msk [vmem:[%s4075_s19 + $0x18] sm:$0xf] %vm2735_vm10, %v2677_v34  ;;  %2982 = vmatmul.msk.bf16.vlgmr.msra.gmra.mxu1 %vm433_vm9, %v3933_v38  ;;  %v1428_v38 = vsel %vm275_vm0, %v1427_v11, %v1386_v0  ;;  %v1513_v34 = vrot.slane %v4145_v14, 4 }
 0x26a   : > { %v1769_v58 = vpop.f32.mrf.mxu3  ;;  %2553 = vmatpush.bf16.msra.mxu0 %v2544_v41  ;;  %2371 = vmatpush.bf16.msra.mxu1 %v2362_v24  ;;  %v1601_v15 = vpack.c.bf16 %v1428_v38, %v1428_v38  ;;  %2752 = vst.msk [vmem:[%s4075_s19 + $0x40] sm:$0xf] %vm2735_vm10, %v2687_v31  ;;  %v1438_v41 = vsel %vm275_vm0, %v1422_v54, %v1437_v62  ;;  %v1433_v24 = vrot.slane %v4127_v6, 4 }
 0x26b   : > { %2743 = vst.msk [vmem:[%s4075_s19 + $0x1c] sm:$0xf] %vm2735_vm10, %v2678_v61  ;;  %v2679_v7 = vpack.c.bf16 %v1769_v58, %v1769_v58  ;;  %v1605_v0 = vpack.c.bf16 %v1436_v36, %v1436_v36  ;;  %v1489_v58 = vrot.slane %v4163_v16, 4  ;;  %v1606_v3 = vpack.c.bf16 %v1438_v41, %v1438_v41 }
 0x26c   : > { %v2445_v28 = vsel %vm446_vm8, %v1601_v15, 0  ;;  %v1434_v38 = vsel %vm275_vm0, %v4100_v45, %v1433_v24 }
 0x26d   : > { %2744 = vst.msk [vmem:[%s4075_s19 + $0x20] sm:$0xf] %vm2735_vm10, %v2679_v7  ;;  %v1514_v7 = vsel %vm275_vm0, %v4121_v23, %v1513_v34  ;;  %v1490_v30 = vsel %vm275_vm0, %v4140_v33, %v1489_v58  ;;  %v2509_v6 = vsel %vm446_vm8, %v1605_v0, 0  ;;  %v1604_v23 = vpack.c.bf16 %v1434_v38, %v1434_v38 }
 0x26e   : > { %v1736_v60 = vpop.f32.mrf.mxu1  ;;  %v1902_v40 = vpop.f32.mrf.mxu0  ;;  %v1522_v16 = vperm.slane %v1514_v7, %v3161_v25  ;;  %v2525_v45 = vsel %vm446_vm8, %v1606_v3, 0  ;;  %v1498_v33 = vperm.slane %v1490_v30, %v3161_v25 }
 0x26f   : > { %v2493_v20 = vsel %vm446_vm8, %v1604_v23, 0  ;;  %v4353_v40 = vld [vmem:[%s3392_s15 + $0x1c] sm:$0xf] }
 0x270   : > { %v1752_v17 = vpop.f32.mrf.mxu2  ;;  %v1539_v43 = vrot.slane %v1522_v16, 4  ;;  %v1541_v57 = vrot.slane %v1498_v33, 4 }
 0x272   : > { %v1771_v46 = vpop.f32.mrf.mxu3  ;;  %v1540_v51 = vsel %vm275_vm0, %v1539_v43, %v1498_v33  ;;  %v1542_v37 = vsel %vm275_vm0, %v1522_v16, %v1541_v57 }
 0x275   : > { %2987 = vmatmul.msk.bf16.vlgmr.msrb.gmra.mxu2 %vm433_vm9, %v4070_v63 }
 0x276   : > { %2454 = vmatpush.bf16.msrb.mxu2 %v2445_v28  ;;  %v1785_v26 = vpop.f32.mrf.mxu1  ;;  %v1964_v19 = vpop.f32.mrf.mxu0  ;;  %v1609_v28 = vpack.c.bf16 %v1540_v51, %v1540_v51 }
 0x277   : > { %2988 = vmatmul.msk.bf16.vlgmr.msrb.gmra.mxu3 %vm433_vm9, %v4070_v63  ;;  %v2680_v12 = vpack.c.bf16 %v1785_v26, %v1785_v26  ;;  %v2691_v14 = vpack.c.bf16 %v1964_v19, %v1964_v19  ;;  %v1526_v26 = vsel %vm275_vm0, %v4187_v21, %v1525_v4 }
 0x278   : > { %2470 = vmatpush.bf16.msrb.mxu3 %v2461_v10  ;;  %v1801_v47 = vpop.f32.mrf.mxu2  ;;  %v1610_v10 = vpack.c.bf16 %v1542_v37, %v1542_v37  ;;  %v1534_v27 = vperm.slane %v1526_v26, %v3161_v25 }
 0x279   : > { %v2681_v39 = vpack.c.bf16 %v1801_v47, %v1801_v47  ;;  %2997 = vmatmul.msk.bf16.vlgmr.msrb.gmra.mxu0 %vm433_vm9, %v4226_v49  ;;  %2745 = vst.msk [vmem:[%s4075_s19 + $0x24] sm:$0xf] %vm2735_vm10, %v2680_v12  ;;  %2986 = vmatmul.msk.bf16.vlgmr.msrb.gmra.mxu1 %vm433_vm9, %v4070_v63  ;;  %v2576_v12 = vsel %vm446_vm8, %v1609_v28, 0 }
 0x27a   : > { %v1817_v53 = vpop.f32.mrf.mxu3  ;;  %2617 = vmatpush.bf16.msrb.mxu0 %v2608_v13  ;;  %2438 = vmatpush.bf16.msrb.mxu1 %v2429_v8  ;;  %2756 = vst.msk [vmem:[%s4075_s19 + $0x50] sm:$0xf] %vm2735_vm10, %v2691_v14  ;;  %v1547_v18 = vrot.slane %v1534_v27, 4 }
 0x27b   : > { %2746 = vst.msk [vmem:[%s4075_s19 + $0x28] sm:$0xf] %vm2735_vm10, %v2681_v39  ;;  %v2682_v9 = vpack.c.bf16 %v1817_v53, %v1817_v53 }
 0x27d   : > { %2747 = vst.msk [vmem:[%s4075_s19 + $0x2c] sm:$0xf] %vm2735_vm10, %v2682_v9 }
 0x27e   : > { %v1787_v52 = vpop.f32.mrf.mxu1  ;;  %v1966_v46 = vpop.f32.mrf.mxu0 }
 0x27f   : > { %v1545_v52 = vrot.slane %v4259_v5, 4 }
 0x280   : > { %v1803_v61 = vpop.f32.mrf.mxu2 }
 0x281   : > { %v1546_v19 = vsel %vm275_vm0, %v4249_v56, %v1545_v52 }
 0x282   : > { %v1819_v11 = vpop.f32.mrf.mxu3  ;;  %v1612_v5 = vpack.c.bf16 %v1546_v19, %v1546_v19 }
 0x284   : > { %v2624_v16 = vsel %vm446_vm8, %v1612_v5, 0 }
 0x285   : > { %2991 = vmatmul.msk.bf16.vlgmr.msra.gmra.mxu2 %vm433_vm9, %v4070_v63 }
 0x286   : > { %2518 = vmatpush.bf16.msra.mxu2 %v2509_v6  ;;  %v1849_v42 = vpop.f32.mrf.mxu1  ;;  %v2031_v54 = vpop.f32.mrf.mxu0 }
 0x287   : > { %2992 = vmatmul.msk.bf16.vlgmr.msra.gmra.mxu3 %vm433_vm9, %v4070_v63  ;;  %v2684_v1 = vpack.c.bf16 %v1849_v42, %v1849_v42  ;;  %v2695_v35 = vpack.c.bf16 %v2031_v54, %v2031_v54 }
 0x288   : > { %2534 = vmatpush.bf16.msra.mxu3 %v2525_v45  ;;  %v1865_v60 = vpop.f32.mrf.mxu2 }
 0x289   : > { %v2685_v17 = vpack.c.bf16 %v1865_v60, %v1865_v60  ;;  %2749 = vst.msk [vmem:[%s4075_s19 + $0x34] sm:$0xf] %vm2735_vm10, %v2684_v1  ;;  %2990 = vmatmul.msk.bf16.vlgmr.msra.gmra.mxu1 %vm433_vm9, %v4070_v63  ;;  %v1537_v63 = vrot.slane %v4193_v22, 4  ;;  %v1502_v22 = vsel %vm275_vm0, %v4208_v32, %v1501_v55  ;;  %3001 = vmatmul.msk.bf16.vlgmr.msra.gmra.mxu0 %vm433_vm9, %v4353_v40 }
 0x28a   : > { %v1881_v15 = vpop.f32.mrf.mxu3  ;;  %2502 = vmatpush.bf16.msra.mxu1 %v2493_v20  ;;  %2760 = vst.msk [vmem:[%s4075_s19 + $0x60] sm:$0xf] %vm2735_vm10, %v2695_v35  ;;  %v1510_v13 = vperm.slane %v1502_v22, %v3161_v25 }
 0x28b   : > { %2750 = vst.msk [vmem:[%s4075_s19 + $0x38] sm:$0xf] %vm2735_vm10, %v2685_v17  ;;  %v2686_v29 = vpack.c.bf16 %v1881_v15, %v1881_v15  ;;  %v1538_v50 = vsel %vm275_vm0, %v4171_v44, %v1537_v63  ;;  %v2592_v44 = vsel %vm446_vm8, %v1610_v10, 0 }
 0x28c   : > { %v1608_v21 = vpack.c.bf16 %v1538_v50, %v1538_v50  ;;  %v1549_v25 = vrot.slane %v1510_v13, 4  ;;  %v1548_v62 = vsel %vm275_vm0, %v1547_v18, %v1510_v13 }
 0x28d   : > { %2751 = vst.msk [vmem:[%s4075_s19 + $0x3c] sm:$0xf] %vm2735_vm10, %v2686_v29  ;;  %v1613_v0 = vpack.c.bf16 %v1548_v62, %v1548_v62 }
 0x28e   : > { %v1851_v2 = vpop.f32.mrf.mxu1  ;;  %v2560_v53 = vsel %vm446_vm8, %v1608_v21, 0  ;;  %v2033_v9 = vpop.f32.mrf.mxu0  ;;  %v1550_v41 = vsel %vm275_vm0, %v1534_v27, %v1549_v25 }
 0x28f   : > { %v1614_v11 = vpack.c.bf16 %v1550_v41, %v1550_v41  ;;  %v2640_v3 = vsel %vm446_vm8, %v1613_v0, 0 }
 0x290   : > { %v1867_v31 = vpop.f32.mrf.mxu2 }
 0x291   : > { %v2656_v14 = vsel %vm446_vm8, %v1614_v11, 0 }
 0x292   : > { %v1883_v48 = vpop.f32.mrf.mxu3 }
 0x295   : > { %2995 = vmatmul.msk.bf16.vlgmr.msrb.gmra.mxu2 %vm433_vm9, %v4226_v49 }
 0x296   : > { %2585 = vmatpush.bf16.msrb.mxu2 %v2576_v12  ;;  %v1916_v47 = vpop.f32.mrf.mxu1  ;;  %v2095_v58 = vpop.f32.mrf.mxu0 }
 0x297   : > { %2996 = vmatmul.msk.bf16.vlgmr.msrb.gmra.mxu3 %vm433_vm9, %v4226_v49  ;;  %v2688_v32 = vpack.c.bf16 %v1916_v47, %v1916_v47  ;;  %v2699_v7 = vpack.c.bf16 %v2095_v58, %v2095_v58 }
 0x298   : > { %2601 = vmatpush.bf16.msrb.mxu3 %v2592_v44  ;;  %v1932_v39 = vpop.f32.mrf.mxu2 }
 0x299   : > { %v2689_v8 = vpack.c.bf16 %v1932_v39, %v1932_v39  ;;  %2753 = vst.msk [vmem:[%s4075_s19 + $0x44] sm:$0xf] %vm2735_vm10, %v2688_v32  ;;  %2994 = vmatmul.msk.bf16.vlgmr.msrb.gmra.mxu1 %vm433_vm9, %v4226_v49  ;;  %3005 = vmatmul.msk.bf16.vlgmr.msrb.gmra.mxu0 %vm433_vm9, %v4353_v40 }
 0x29a   : > { %v1948_v59 = vpop.f32.mrf.mxu3  ;;  %2569 = vmatpush.bf16.msrb.mxu1 %v2560_v53  ;;  %2764 = vst.msk [vmem:[%s4075_s19 + $0x70] sm:$0xf] %vm2735_vm10, %v2699_v7 }
 0x29b   : > { %2754 = vst.msk [vmem:[%s4075_s19 + $0x48] sm:$0xf] %vm2735_vm10, %v2689_v8  ;;  %v2690_v36 = vpack.c.bf16 %v1948_v59, %v1948_v59 }
 0x29d   : > { %2755 = vst.msk [vmem:[%s4075_s19 + $0x4c] sm:$0xf] %vm2735_vm10, %v2690_v36 }
 0x29e   : > { %v1918_v34 = vpop.f32.mrf.mxu1  ;;  %v2097_v42 = vpop.f32.mrf.mxu0 }
 0x2a0   : > { %v1934_v61 = vpop.f32.mrf.mxu2 }
 0x2a2   : > { %v1950_v24 = vpop.f32.mrf.mxu3 }
 0x2a5   : > { %2999 = vmatmul.msk.bf16.vlgmr.msra.gmra.mxu2 %vm433_vm9, %v4226_v49 }
 0x2a6   : > { %2649 = vmatpush.bf16.msra.mxu2 %v2640_v3  ;;  %v1980_v38 = vpop.f32.mrf.mxu1 }
 0x2a7   : > { %3000 = vmatmul.msk.bf16.vlgmr.msra.gmra.mxu3 %vm433_vm9, %v4226_v49  ;;  %v2692_v30 = vpack.c.bf16 %v1980_v38, %v1980_v38 }
 0x2a8   : > { %2665 = vmatpush.bf16.msra.mxu3 %v2656_v14  ;;  %v1996_v56 = vpop.f32.mrf.mxu2 }
 0x2a9   : > { %v2693_v6 = vpack.c.bf16 %v1996_v56, %v1996_v56  ;;  %2757 = vst.msk [vmem:[%s4075_s19 + $0x54] sm:$0xf] %vm2735_vm10, %v2692_v30  ;;  %2998 = vmatmul.msk.bf16.vlgmr.msra.gmra.mxu1 %vm433_vm9, %v4226_v49  ;;  %v2162_v49 = vpop.f32.mrf.mxu0 }
 0x2aa   : > { %v2012_v23 = vpop.f32.mrf.mxu3  ;;  %2633 = vmatpush.bf16.msra.mxu1 %v2624_v16  ;;  %v2703_v17 = vpack.c.bf16 %v2162_v49, %v2162_v49 }
 0x2ab   : > { %2758 = vst.msk [vmem:[%s4075_s19 + $0x58] sm:$0xf] %vm2735_vm10, %v2693_v6  ;;  %v2694_v45 = vpack.c.bf16 %v2012_v23, %v2012_v23 }
 0x2ac   : > { %2768 = vst.msk [vmem:[%s4075_s19 + $0x80] sm:$0xf] %vm2735_vm10, %v2703_v17 }
 0x2ad   : > { %2759 = vst.msk [vmem:[%s4075_s19 + $0x5c] sm:$0xf] %vm2735_vm10, %v2694_v45 }
 0x2ae   : > { %v1982_v33 = vpop.f32.mrf.mxu1 }
 0x2b0   : > { %v1998_v1 = vpop.f32.mrf.mxu2 }
 0x2b1   : > { %v2164_v57 = vpop.f32.mrf.mxu0 }
 0x2b2   : > { %v2014_v60 = vpop.f32.mrf.mxu3 }
 0x2b5   : > { %3003 = vmatmul.msk.bf16.vlgmr.msrb.gmra.mxu2 %vm433_vm9, %v4353_v40 }
 0x2b6   : > { %v2047_v20 = vpop.f32.mrf.mxu1 }
 0x2b7   : > { %3004 = vmatmul.msk.bf16.vlgmr.msrb.gmra.mxu3 %vm433_vm9, %v4353_v40  ;;  %v2696_v15 = vpack.c.bf16 %v2047_v20, %v2047_v20 }
 0x2b8   : > { %v2063_v43 = vpop.f32.mrf.mxu2 }
 0x2b9   : > { %v2697_v46 = vpack.c.bf16 %v2063_v43, %v2063_v43  ;;  %2761 = vst.msk [vmem:[%s4075_s19 + $0x64] sm:$0xf] %vm2735_vm10, %v2696_v15  ;;  %3002 = vmatmul.msk.bf16.vlgmr.msrb.gmra.mxu1 %vm433_vm9, %v4353_v40  ;;  %v2226_v31 = vpop.f32.mrf.mxu0 }
 0x2ba   : > { %v2079_v29 = vpop.f32.mrf.mxu3  ;;  %v2707_v37 = vpack.c.bf16 %v2226_v31, %v2226_v31 }
 0x2bb   : > { %2762 = vst.msk [vmem:[%s4075_s19 + $0x68] sm:$0xf] %vm2735_vm10, %v2697_v46  ;;  %v2698_v51 = vpack.c.bf16 %v2079_v29, %v2079_v29 }
 0x2bc   : > { %2772 = vst.msk [vmem:[%s4075_s19 + $0x90] sm:$0xf] %vm2735_vm10, %v2707_v37 }
 0x2bd   : > { %2763 = vst.msk [vmem:[%s4075_s19 + $0x6c] sm:$0xf] %vm2735_vm10, %v2698_v51 }
 0x2be   : > { %v2049_v4 = vpop.f32.mrf.mxu1 }
 0x2c0   : > { %v2065_v2 = vpop.f32.mrf.mxu2 }
 0x2c1   : > { %v2228_v10 = vpop.f32.mrf.mxu0 }
 0x2c2   : > { %v2081_v63 = vpop.f32.mrf.mxu3 }
 0x2c5   : > { %3007 = vmatmul.msk.bf16.vlgmr.msra.gmra.mxu2 %vm433_vm9, %v4353_v40 }
 0x2c6   : > { %v2111_v28 = vpop.f32.mrf.mxu1 }
 0x2c7   : > { %3008 = vmatmul.msk.bf16.vlgmr.msra.gmra.mxu3 %vm433_vm9, %v4353_v40  ;;  %v2700_v55 = vpack.c.bf16 %v2111_v28, %v2111_v28 }
 0x2c8   : > { %v2127_v48 = vpop.f32.mrf.mxu2 }
 0x2c9   : > { %v2701_v54 = vpack.c.bf16 %v2127_v48, %v2127_v48  ;;  %2765 = vst.msk [vmem:[%s4075_s19 + $0x74] sm:$0xf] %vm2735_vm10, %v2700_v55  ;;  %3006 = vmatmul.msk.bf16.vlgmr.msra.gmra.mxu1 %vm433_vm9, %v4353_v40  ;;  %v2293_v27 = vpop.f32.mrf.mxu0 }
 0x2ca   : > { %v2143_v26 = vpop.f32.mrf.mxu3  ;;  %v2711_v21 = vpack.c.bf16 %v2293_v27, %v2293_v27 }
 0x2cb   : > { %2766 = vst.msk [vmem:[%s4075_s19 + $0x78] sm:$0xf] %vm2735_vm10, %v2701_v54  ;;  %v2702_v50 = vpack.c.bf16 %v2143_v26, %v2143_v26 }
 0x2cc   : > { %2776 = vst.msk [vmem:[%s4075_s19 + $0xa0] sm:$0xf] %vm2735_vm10, %v2711_v21 }
 0x2cd   : > { %2767 = vst.msk [vmem:[%s4075_s19 + $0x7c] sm:$0xf] %vm2735_vm10, %v2702_v50 }
 0x2ce   : > { %v2113_v35 = vpop.f32.mrf.mxu1 }
 0x2d0   : > { %v2129_v22 = vpop.f32.mrf.mxu2 }
 0x2d1   : > { %v2295_v8 = vpop.f32.mrf.mxu0 }
 0x2d2   : > { %v2145_v12 = vpop.f32.mrf.mxu3 }
 0x2d6   : > { %v2178_v47 = vpop.f32.mrf.mxu1 }
 0x2d7   : > { %v2704_v44 = vpack.c.bf16 %v2178_v47, %v2178_v47 }
 0x2d8   : > { %v2194_v32 = vpop.f32.mrf.mxu2 }
 0x2d9   : > { %v2705_v39 = vpack.c.bf16 %v2194_v32, %v2194_v32  ;;  %2769 = vst.msk [vmem:[%s4075_s19 + $0x84] sm:$0xf] %vm2735_vm10, %v2704_v44  ;;  %v2357_v9 = vpop.f32.mrf.mxu0 }
 0x2da   : > { %v2210_v13 = vpop.f32.mrf.mxu3  ;;  %v2715_v36 = vpack.c.bf16 %v2357_v9, %v2357_v9 }
 0x2db   : > { %2770 = vst.msk [vmem:[%s4075_s19 + $0x88] sm:$0xf] %vm2735_vm10, %v2705_v39  ;;  %v2706_v53 = vpack.c.bf16 %v2210_v13, %v2210_v13 }
 0x2dc   : > { %2780 = vst.msk [vmem:[%s4075_s19 + $0xb0] sm:$0xf] %vm2735_vm10, %v2715_v36 }
 0x2dd   : > { %2771 = vst.msk [vmem:[%s4075_s19 + $0x8c] sm:$0xf] %vm2735_vm10, %v2706_v53 }
 0x2de   : > { %v2180_v59 = vpop.f32.mrf.mxu1 }
 0x2e0   : > { %v2196_v18 = vpop.f32.mrf.mxu2 }
 0x2e1   : > { %v2359_v41 = vpop.f32.mrf.mxu0 }
 0x2e2   : > { %v2212_v40 = vpop.f32.mrf.mxu3 }
 0x2e6   : > { %v2242_v25 = vpop.f32.mrf.mxu1 }
 0x2e7   : > { %v2708_v62 = vpack.c.bf16 %v2242_v25, %v2242_v25 }
 0x2e8   : > { %v2258_v34 = vpop.f32.mrf.mxu2 }
 0x2e9   : > { %v2709_v52 = vpack.c.bf16 %v2258_v34, %v2258_v34  ;;  %2773 = vst.msk [vmem:[%s4075_s19 + $0x94] sm:$0xf] %vm2735_vm10, %v2708_v62  ;;  %v2424_v19 = vpop.f32.mrf.mxu0 }
 0x2ea   : > { %v2274_v61 = vpop.f32.mrf.mxu3  ;;  %v2719_v7 = vpack.c.bf16 %v2424_v19, %v2424_v19 }
 0x2eb   : > { %2774 = vst.msk [vmem:[%s4075_s19 + $0x98] sm:$0xf] %vm2735_vm10, %v2709_v52  ;;  %v2710_v0 = vpack.c.bf16 %v2274_v61, %v2274_v61 }
 0x2ec   : > { %2784 = vst.msk [vmem:[%s4075_s19 + $0xc0] sm:$0xf] %vm2735_vm10, %v2719_v7 }
 0x2ed   : > { %2775 = vst.msk [vmem:[%s4075_s19 + $0x9c] sm:$0xf] %vm2735_vm10, %v2710_v0 }
 0x2ee   : > { %v2244_v24 = vpop.f32.mrf.mxu1 }
 0x2f0   : > { %v2260_v58 = vpop.f32.mrf.mxu2 }
 0x2f1   : > { %v2426_v56 = vpop.f32.mrf.mxu0 }
 0x2f2   : > { %v2276_v11 = vpop.f32.mrf.mxu3 }
 0x2f6   : > { %v2309_v3 = vpop.f32.mrf.mxu1 }
 0x2f7   : > { %v2712_v5 = vpack.c.bf16 %v2309_v3, %v2309_v3 }
 0x2f8   : > { %v2325_v38 = vpop.f32.mrf.mxu2 }
 0x2f9   : > { %v2713_v14 = vpack.c.bf16 %v2325_v38, %v2325_v38  ;;  %2777 = vst.msk [vmem:[%s4075_s19 + $0xa4] sm:$0xf] %vm2735_vm10, %v2712_v5  ;;  %v2488_v45 = vpop.f32.mrf.mxu0 }
 0x2fa   : > { %v2341_v30 = vpop.f32.mrf.mxu3  ;;  %v2723_v33 = vpack.c.bf16 %v2488_v45, %v2488_v45 }
 0x2fb   : > { %2778 = vst.msk [vmem:[%s4075_s19 + $0xa8] sm:$0xf] %vm2735_vm10, %v2713_v14  ;;  %v2714_v6 = vpack.c.bf16 %v2341_v30, %v2341_v30 }
 0x2fc   : > { %2788 = vst.msk [vmem:[%s4075_s19 + $0xd0] sm:$0xf] %vm2735_vm10, %v2723_v33 }
 0x2fd   : > { %2779 = vst.msk [vmem:[%s4075_s19 + $0xac] sm:$0xf] %vm2735_vm10, %v2714_v6 }
 0x2fe   : > { %v2311_v16 = vpop.f32.mrf.mxu1 }
 0x300   : > { %v2327_v23 = vpop.f32.mrf.mxu2 }
 0x301   : > { %v2490_v15 = vpop.f32.mrf.mxu0 }
 0x302   : > { %v2343_v42 = vpop.f32.mrf.mxu3 }
 0x306   : > { %v2373_v1 = vpop.f32.mrf.mxu1 }
 0x307   : > { %v2716_v60 = vpack.c.bf16 %v2373_v1, %v2373_v1 }
 0x308   : > { %v2389_v49 = vpop.f32.mrf.mxu2 }
 0x309   : > { %v2717_v17 = vpack.c.bf16 %v2389_v49, %v2389_v49  ;;  %2781 = vst.msk [vmem:[%s4075_s19 + $0xb4] sm:$0xf] %vm2735_vm10, %v2716_v60  ;;  %v2555_v63 = vpop.f32.mrf.mxu0 }
 0x30a   : > { %v2405_v20 = vpop.f32.mrf.mxu3  ;;  %v2727_v37 = vpack.c.bf16 %v2555_v63, %v2555_v63 }
 0x30b   : > { %2782 = vst.msk [vmem:[%s4075_s19 + $0xb8] sm:$0xf] %vm2735_vm10, %v2717_v17  ;;  %v2718_v43 = vpack.c.bf16 %v2405_v20, %v2405_v20 }
 0x30c   : > { %2792 = vst.msk [vmem:[%s4075_s19 + $0xe0] sm:$0xf] %vm2735_vm10, %v2727_v37 }
 0x30d   : > { %2783 = vst.msk [vmem:[%s4075_s19 + $0xbc] sm:$0xf] %vm2735_vm10, %v2718_v43 }
 0x30e   : > { %v2375_v46 = vpop.f32.mrf.mxu1 }
 0x310   : > { %v2391_v29 = vpop.f32.mrf.mxu2 }
 0x311   : > { %v2557_v26 = vpop.f32.mrf.mxu0 }
 0x312   : > { %v2407_v57 = vpop.f32.mrf.mxu3 }
 0x316   : > { %v2440_v51 = vpop.f32.mrf.mxu1 }
 0x317   : > { %v2720_v4 = vpack.c.bf16 %v2440_v51, %v2440_v51 }
 0x318   : > { %v2456_v2 = vpop.f32.mrf.mxu2 }
 0x319   : > { %v2721_v31 = vpack.c.bf16 %v2456_v2, %v2456_v2  ;;  %2785 = vst.msk [vmem:[%s4075_s19 + $0xc4] sm:$0xf] %vm2735_vm10, %v2720_v4  ;;  %v2619_v12 = vpop.f32.mrf.mxu0 }
 0x31a   : > { %v2472_v28 = vpop.f32.mrf.mxu3  ;;  %v2731_v21 = vpack.c.bf16 %v2619_v12, %v2619_v12 }
 0x31b   : > { %2786 = vst.msk [vmem:[%s4075_s19 + $0xc8] sm:$0xf] %vm2735_vm10, %v2721_v31  ;;  %v2722_v55 = vpack.c.bf16 %v2472_v28, %v2472_v28 }
 0x31c   : > { %2796 = vst.msk [vmem:[%s4075_s19 + $0xf0] sm:$0xf] %vm2735_vm10, %v2731_v21 }
 0x31d   : > { %2787 = vst.msk [vmem:[%s4075_s19 + $0xcc] sm:$0xf] %vm2735_vm10, %v2722_v55 }
 0x31e   : > { %v2442_v48 = vpop.f32.mrf.mxu1 }
 0x320   : > { %v2458_v54 = vpop.f32.mrf.mxu2 }
 0x321   : > { %v2621_v13 = vpop.f32.mrf.mxu0 }
 0x322   : > { %v2474_v10 = vpop.f32.mrf.mxu3 }
 0x326   : > { %v2504_v50 = vpop.f32.mrf.mxu1 }
 0x327   : > { %v2724_v35 = vpack.c.bf16 %v2504_v50, %v2504_v50 }
 0x328   : > { %v2520_v22 = vpop.f32.mrf.mxu2 }
 0x329   : > { %v2725_v27 = vpack.c.bf16 %v2520_v22, %v2520_v22  ;;  %2789 = vst.msk [vmem:[%s4075_s19 + $0xd4] sm:$0xf] %vm2735_vm10, %v2724_v35 }
 0x32a   : > { %v2536_v47 = vpop.f32.mrf.mxu3 }
 0x32b   : > { %2790 = vst.msk [vmem:[%s4075_s19 + $0xd8] sm:$0xf] %vm2735_vm10, %v2725_v27  ;;  %v2726_v44 = vpack.c.bf16 %v2536_v47, %v2536_v47 }
 0x32d   : > { %2791 = vst.msk [vmem:[%s4075_s19 + $0xdc] sm:$0xf] %vm2735_vm10, %v2726_v44 }
 0x32e   : > { %v2506_v32 = vpop.f32.mrf.mxu1 }
 0x330   : > { %v2522_v39 = vpop.f32.mrf.mxu2 }
 0x332   : > { %v2538_v8 = vpop.f32.mrf.mxu3 }
 0x336   : > { %v2571_v53 = vpop.f32.mrf.mxu1 }
 0x337   : > { %v2728_v59 = vpack.c.bf16 %v2571_v53, %v2571_v53 }
 0x338   : > { %v2587_v18 = vpop.f32.mrf.mxu2 }
 0x339   : > { %v2729_v40 = vpack.c.bf16 %v2587_v18, %v2587_v18  ;;  %2793 = vst.msk [vmem:[%s4075_s19 + $0xe4] sm:$0xf] %vm2735_vm10, %v2728_v59 }
 0x33a   : > { %v2603_v9 = vpop.f32.mrf.mxu3 }
 0x33b   : > { %2794 = vst.msk [vmem:[%s4075_s19 + $0xe8] sm:$0xf] %vm2735_vm10, %v2729_v40  ;;  %v2730_v36 = vpack.c.bf16 %v2603_v9, %v2603_v9 }
 0x33d   : > { %2795 = vst.msk [vmem:[%s4075_s19 + $0xec] sm:$0xf] %vm2735_vm10, %v2730_v36 }
 0x33e   : > { %v2573_v25 = vpop.f32.mrf.mxu1 }
 0x340   : > { %v2589_v62 = vpop.f32.mrf.mxu2 }
 0x342   : > { %v2605_v34 = vpop.f32.mrf.mxu3 }
 0x346   : > { %v2635_v52 = vpop.f32.mrf.mxu1 }
 0x347   : > { %v2732_v61 = vpack.c.bf16 %v2635_v52, %v2635_v52 }
 0x348   : > { %v2651_v41 = vpop.f32.mrf.mxu2 }
 0x349   : > { %v2733_v0 = vpack.c.bf16 %v2651_v41, %v2651_v41  ;;  %2797 = vst.msk [vmem:[%s4075_s19 + $0xf4] sm:$0xf] %vm2735_vm10, %v2732_v61 }
 0x34a   : > { %v2667_v24 = vpop.f32.mrf.mxu3 }
 0x34b   : > { %2798 = vst.msk [vmem:[%s4075_s19 + $0xf8] sm:$0xf] %vm2735_vm10, %v2733_v0  ;;  %v2734_v58 = vpack.c.bf16 %v2667_v24, %v2667_v24 }
 0x34d   : > { %2799 = vst.msk [vmem:[%s4075_s19 + $0xfc] sm:$0xf] %vm2735_vm10, %v2734_v58 }
 0x34e   : > { %v2637_v11 = vpop.f32.mrf.mxu1 }
 0x350   : > { %v2653_v19 = vpop.f32.mrf.mxu2 }
 0x352   : > { %v2669_v7 = vpop.f32.mrf.mxu3 }
 0x353 PF: > { %s22_s21 = sadd.s32 1, %s3087_s21   ;;  %s4487_s19 = smov %s3083_s20 }
 0x354   : > { %p19_p6 = scmp.ge.s32.totalorder %s22_s21, 5   ;;  %s4488_s20 = smov %s4490_s0 }
 0x356   :  { %21 = sbr.rel (!%p19_p6) target bundleno = 8 (0x8), region = 68 }

</bundles_post_ra>
